<compile_context>
chip_gen: v6e
topology: v6e:2x2x1
jax: 0.10.0
libtpu: 0.0.40
codegen_flags: <defaults>
</compile_context>

<pallas_src>
import functools

import jax
import jax.numpy as jnp
from jax.experimental import pallas as pl
from jax.experimental.pallas import tpu as pltpu


# --------------------------------------------------------------------------- #
# Kernel
# --------------------------------------------------------------------------- #
def _head_kernel(x_ref, w1_ref, b1_ref, w2_ref, b2_ref, o_ref, acc_ref, *,
                 total_l, reduce_over_l, c_tile):
    """One (batch-tile, stream-tile) grid step.

    reduce_over_l = True : x_ref is (n_tile, C, l_tile); axis 1 walks L tiles.
    reduce_over_l = False: x_ref is (n_tile, c_tile, L); axis 1 walks C tiles.
    acc_ref: (n_tile, C) f32 resident pooled-sum scratch.
    o_ref  : (n_tile, num_classes), written on the last axis-1 step only.
    """
    step = pl.program_id(1)

    # Partial spatial sum on the lane axis (XLU); accumulate in f32 regardless
    # of the streamed activation dtype.
    part = jnp.sum(x_ref[...].astype(jnp.float32), axis=-1)

    if reduce_over_l:
        @pl.when(step == 0)
        def _init():
            acc_ref[...] = jnp.zeros_like(acc_ref)

        acc_ref[...] += part                                   # (n_tile, C)
    else:
        # Each step owns the FULL spatial extent of a disjoint channel slice,
        # so it writes (not accumulates) its slice of the pooled vector.
        off = pl.multiple_of(step * c_tile, c_tile)
        acc_ref[:, pl.ds(off, c_tile)] = part                  # (n_tile, c_tile)

    @pl.when(step == pl.num_programs(1) - 1)
    def _finalize():
        # AdaptiveAvgPool2d(1) + Flatten: mean over the true spatial size.
        pooled = acc_ref[...] * (1.0 / float(total_l))          # (n_tile, C)

        # Linear(in_channels, hidden_dim)
        h = jnp.dot(pooled, w1_ref[...],
                    preferred_element_type=jnp.float32,
                    precision=jax.lax.Precision.HIGHEST) + b1_ref[...]
        # Linear(hidden_dim, num_classes)
        logits = jnp.dot(h, w2_ref[...],
                         preferred_element_type=jnp.float32,
                         precision=jax.lax.Precision.HIGHEST) + b2_ref[...]

        # Softmax(dim=1), numerically stable.
        m = jnp.max(logits, axis=-1, keepdims=True)
        e = jnp.exp(logits - m)
        denom = jnp.sum(e, axis=-1, keepdims=True)
        o_ref[...] = (e * pl.reciprocal(denom, approx=False)).astype(o_ref.dtype)


# --------------------------------------------------------------------------- #
# Tile / budget selection
# --------------------------------------------------------------------------- #
def _vmem_budget_bytes():
    """~3/4 of this generation's physical VMEM (compiler headroom); 48 MiB fallback."""
    try:
        cap = int(pltpu.get_tpu_info().vmem_capacity_bytes)
    except Exception:
        cap = 64 * 1024 * 1024        # v7x per-TensorCore floor
    return (cap * 3) // 4


def _candidate_tiles(dim, unit):
    """Tile sizes along `dim`: the full extent plus every multiple of `unit`
    that evenly divides `dim` (so no partial/edge tiles ever exist)."""
    cands = {dim}
    for t in range(unit, dim, unit):
        if dim % t == 0:
            cands.add(t)
    return sorted(cands, reverse=True)


def _choose_tiles(n, c, l, hidden, k, x_itemsize, budget):
    """Joint (n_tile, c_block, l_block) choice under a VMEM byte budget.

    Accounts for lane(128)/sublane(8) padding, double-buffered activations,
    (conservatively) double-buffered weights, the f32 accumulator and output.
    Prefers configurations with >=2 batch tiles (v7x megacore), then the
    largest streamed block (HBM-roofline / per-step-overhead argument).
    """
    def pad(v, m):
        return -(-v // m) * m

    # Weights/biases: assume double-buffered (worst case; we try Buffered(1)).
    w_bytes = 2 * (pad(c, 8) * pad(hidden, 128) + pad(1, 8) * pad(hidden, 128)
                   + pad(hidden, 8) * pad(k, 128) + pad(1, 8) * pad(k, 128)) * 4

    def footprint(nt, cb, lb):
        x_b = 2 * nt * pad(cb, 8) * pad(lb, 128) * x_itemsize   # double-buffered x
        acc = pad(nt, 8) * pad(c, 128) * 4
        outb = 2 * pad(nt, 8) * pad(k, 128) * 4
        return w_bytes + x_b + acc + outb

    reduce_over_l = (l % 128 == 0) and (l >= 256)
    if reduce_over_l:
        stream_cands = [(c, lb) for lb in _candidate_tiles(l, 128)]
    else:
        stream_cands = [(cb, l) for cb in _candidate_tiles(c, 8)]
    n_cands = _candidate_tiles(n, 8)

    best_key, best_cfg = None, None
    for nt in n_cands:
        for cb, lb in stream_cands:
            tot = footprint(nt, cb, lb)
            per_buf = nt * pad(cb, 8) * pad(lb, 128) * x_itemsize
            if tot <= budget:
                key = (1, int(n // nt >= 2), per_buf)
            else:
                key = (0, 0, -tot)       # best-effort: smallest footprint
            if best_key is None or key > best_key:
                best_key, best_cfg = key, (nt, cb, lb)

    nt, cb, lb = best_cfg
    return nt, cb, lb, reduce_over_l


# --------------------------------------------------------------------------- #
# Wrapper
# --------------------------------------------------------------------------- #
def classification_head(x_nchw, w1, b1, w2, b2, *, vmem_budget_bytes=None):
    """x_nchw: (N, C, H, W). Returns (N, num_classes) softmax probs (f32)."""
    n, c, h, w = x_nchw.shape
    hidden = w1.shape[1]
    num_classes = w2.shape[1]
    l = h * w

    # NCHW -> (N, C, L): pure reshape, no transpose, no extra HBM pass, no cast.
    x_ncl = x_nchw.reshape(n, c, l)
    b1_2d = b1.reshape(1, hidden)
    b2_2d = b2.reshape(1, num_classes)

    device_budget = _vmem_budget_bytes()
    budget = device_budget if vmem_budget_bytes is None else min(int(vmem_budget_bytes),
                                                                 device_budget)
    x_itemsize = jnp.dtype(x_nchw.dtype).itemsize
    n_tile, c_blk, l_blk, reduce_over_l = _choose_tiles(
        n, c, l, hidden, num_classes, x_itemsize, budget)

    if reduce_over_l:
        grid = (n // n_tile, l // l_blk)
        x_spec_args = ((n_tile, c, l_blk), lambda b, s: (b, 0, s))
    else:
        grid = (n // n_tile, c // c_blk)
        x_spec_args = ((n_tile, c_blk, l), lambda b, s: (b, s, 0))

    kernel = functools.partial(_head_kernel, total_l=l,
                               reduce_over_l=reduce_over_l, c_tile=c_blk)

    def run(single_buffer_weights):
        w_mode = {}
        if single_buffer_weights:
            # Weights never change across the grid: one buffer is enough and
            # frees VMEM for a larger activation tile (biggest payoff on v7x).
            w_mode = dict(pipeline_mode=pl.Buffered(1))
        return pl.pallas_call(
            kernel,
            out_shape=jax.ShapeDtypeStruct((n, num_classes), jnp.float32),
            grid=grid,
            in_specs=[
                # Activation stream (double-buffered by default).
                pl.BlockSpec(*x_spec_args),
                # Weights / biases: constant block index -> DMA'd once, resident.
                pl.BlockSpec((c, hidden), lambda b, s: (0, 0), **w_mode),
                pl.BlockSpec((1, hidden), lambda b, s: (0, 0), **w_mode),
                pl.BlockSpec((hidden, num_classes), lambda b, s: (0, 0), **w_mode),
                pl.BlockSpec((1, num_classes), lambda b, s: (0, 0), **w_mode),
            ],
            # Output block revisited across axis 1; written only on the last step.
            out_specs=pl.BlockSpec((n_tile, num_classes), lambda b, s: (b, 0)),
            scratch_shapes=[pltpu.VMEM((n_tile, c), jnp.float32)],
            compiler_params=pltpu.CompilerParams(
                # Axis 1 is the pooled-sum walk: MUST stay sequential/"arbitrary".
                dimension_semantics=("parallel", "arbitrary"),
                vmem_limit_bytes=int(device_budget),
            ),
        )(x_ncl, w1, b1_2d, w2, b2_2d)

    try:
        return run(True)
    except Exception:
        # Installed Pallas may reject buffer_count=1; default double-buffering
        # of the (small, constant) weight blocks is a pure-VMEM fallback.
        return run(False)


# --------------------------------------------------------------------------- #
# Reference + test
# --------------------------------------------------------------------------- #
def _ref_forward(x_nchw, w1, b1, w2, b2):
    pooled = jnp.mean(x_nchw, axis=(2, 3))            # (N, C)
    logits = (pooled @ w1 + b1) @ w2 + b2
    return jax.nn.softmax(logits, axis=1)


def _make_params(key, c, hidden, k):
    kw1, kb1, kw2, kb2 = jax.random.split(key, 4)
    bound1 = 1.0 / jnp.sqrt(jnp.float32(c))
    w1 = jax.random.uniform(kw1, (c, hidden), jnp.float32, -bound1, bound1)
    b1 = jax.random.uniform(kb1, (hidden,), jnp.float32, -bound1, bound1)
    bound2 = 1.0 / jnp.sqrt(jnp.float32(hidden))
    w2 = jax.random.uniform(kw2, (hidden, k), jnp.float32, -bound2, bound2)
    b2 = jax.random.uniform(kb2, (k,), jnp.float32, -bound2, bound2)
    return w1, b1, w2, b2


if __name__ == "__main__":
    key = jax.random.PRNGKey(0)

    # (N, C, H, W, hidden, classes, forced VMEM budget)  -- path exercised
    cases = [
        (4, 32, 32, 32, 16, 3, 256 * 1024),   # L=1024: multi-L-tile streaming path
        (2, 64, 7, 7, 32, 3, 192 * 1024),     # L=49: small/odd L -> channel-tiled path
        (2, 48, 14, 14, 32, 3, None),         # default device budget, full-block path
    ]

    for idx, (N, C, H, W, HIDDEN, K, budget) in enumerate(cases):
        kx, kp, key = jax.random.split(key, 3)
        x = jax.random.normal(kx, (N, C, H, W), dtype=jnp.float32)
        w1, b1, w2, b2 = _make_params(kp, C, HIDDEN, K)

        out = jax.block_until_ready(
            classification_head(x, w1, b1, w2, b2, vmem_budget_bytes=budget))
        ref = _ref_forward(x, w1, b1, w2, b2)

        assert out.shape == (N, K), f"case {idx}: bad shape {out.shape}"
        assert jnp.allclose(out, ref, atol=1e-5, rtol=1e-5), f"case {idx}: mismatch vs ref"
        assert jnp.allclose(jnp.sum(out, axis=1), 1.0, atol=1e-5), \
            f"case {idx}: softmax rows must sum to 1"

    print("KERNEL_OK")
</pallas_src>

<mosaic_0001>
module attributes {stable_mosaic.version = 11 : i64} {
  func.func @_head_kernel(%arg0: i32, %arg1: i32, %arg2: memref<4x32x128xf32, #tpu.memory_space<vmem>>, %arg3: memref<32x16xf32, #tpu.memory_space<vmem>>, %arg4: memref<1x16xf32, #tpu.memory_space<vmem>>, %arg5: memref<16x3xf32, #tpu.memory_space<vmem>>, %arg6: memref<1x3xf32, #tpu.memory_space<vmem>>, %arg7: memref<4x3xf32, #tpu.memory_space<vmem>>, %arg8: memref<4x32xf32, #tpu.memory_space<vmem>>) attributes {dimension_semantics = [#tpu.dimension_semantics<parallel>, #tpu.dimension_semantics<arbitrary>], iteration_bounds = array<i64: 1, 8>, scalar_prefetch = 0 : i64, scratch_operands = 1 : i64, tpu.core_type = #tpu.core_type<tc>, window_params = [{transform_indices = @transform_0, window_bounds = array<i64: 4, 32, 128>}, {pipeline_mode = #tpu.pipeline_mode<synchronous>, transform_indices = @transform_1, window_bounds = array<i64: 32, 16>}, {pipeline_mode = #tpu.pipeline_mode<synchronous>, transform_indices = @transform_2, window_bounds = array<i64: 1, 16>}, {pipeline_mode = #tpu.pipeline_mode<synchronous>, transform_indices = @transform_3, window_bounds = array<i64: 16, 3>}, {pipeline_mode = #tpu.pipeline_mode<synchronous>, transform_indices = @transform_4, window_bounds = array<i64: 1, 3>}, {transform_indices = @transform_5, window_bounds = array<i64: 4, 3>}]} {
    %c0 = arith.constant 0 : index
    %c0_0 = arith.constant 0 : index
    %c0_1 = arith.constant 0 : index
    %0 = vector.load %arg2[%c0, %c0_0, %c0_1] : memref<4x32x128xf32, #tpu.memory_space<vmem>>, vector<4x32x128xf32>
    %cst = arith.constant dense<0.000000e+00> : vector<4x32xf32>
    %1 = vector.multi_reduction <add>, %0, %cst [2] : vector<4x32x128xf32> to vector<4x32xf32>
    %c0_i32 = arith.constant 0 : i32
    %2 = arith.cmpi eq, %arg1, %c0_i32 : i32
    %3 = arith.extui %2 : i1 to i32
    %c0_i32_2 = arith.constant 0 : i32
    %4 = arith.cmpi ne, %3, %c0_i32_2 : i32
    scf.if %4 {
      %cst_8 = arith.constant 0.000000e+00 : f32
      %11 = vector.broadcast %cst_8 : f32 to vector<4x32xf32>
      %c0_9 = arith.constant 0 : index
      %c0_10 = arith.constant 0 : index
      %12 = vector.load %arg8[%c0_9, %c0_10] : memref<4x32xf32, #tpu.memory_space<vmem>>, vector<4x32xf32>
      tpu.vector_store %arg8[%c0_9, %c0_10], %11 {strides = array<i32>} : memref<4x32xf32, #tpu.memory_space<vmem>>, vector<4x32xf32>,
    } else {
    }
    %c0_3 = arith.constant 0 : index
    %c0_4 = arith.constant 0 : index
    %5 = vector.load %arg8[%c0_3, %c0_4] : memref<4x32xf32, #tpu.memory_space<vmem>>, vector<4x32xf32>
    %6 = arith.addf %5, %1 : vector<4x32xf32>
    %c0_5 = arith.constant 0 : index
    %c0_6 = arith.constant 0 : index
    %7 = vector.load %arg8[%c0_5, %c0_6] : memref<4x32xf32, #tpu.memory_space<vmem>>, vector<4x32xf32>
    tpu.vector_store %arg8[%c0_5, %c0_6], %6 {strides = array<i32>} : memref<4x32xf32, #tpu.memory_space<vmem>>, vector<4x32xf32>,
    %c7_i32 = arith.constant 7 : i32
    %8 = arith.cmpi eq, %arg1, %c7_i32 : i32
    %9 = arith.extui %8 : i1 to i32
    %c0_i32_7 = arith.constant 0 : i32
    %10 = arith.cmpi ne, %9, %c0_i32_7 : i32
    scf.if %10 {
      %c0_8 = arith.constant 0 : index
      %c0_9 = arith.constant 0 : index
      %11 = vector.load %arg8[%c0_8, %c0_9] : memref<4x32xf32, #tpu.memory_space<vmem>>, vector<4x32xf32>
      %cst_10 = arith.constant 9.765625E-4 : f32
      %12 = vector.broadcast %cst_10 : f32 to vector<4x32xf32>
      %13 = arith.mulf %11, %12 : vector<4x32xf32>
      %c0_11 = arith.constant 0 : index
      %c0_12 = arith.constant 0 : index
      %14 = vector.load %arg3[%c0_11, %c0_12] : memref<32x16xf32, #tpu.memory_space<vmem>>, vector<32x16xf32>
      %cst_13 = arith.constant dense<0.000000e+00> : vector<4x16xf32>
      %15 = tpu.matmul %13, %14, %cst_13 {dimension_numbers = #tpu.dot_dimension_numbers<[1], [0], [0], [1], [0, 0, 1, 1], [], []>, precision = #tpu.contract_precision<fp32>} : vector<4x32xf32>, vector<32x16xf32>, vector<4x16xf32> -> vector<4x16xf32>
      %c0_14 = arith.constant 0 : index
      %c0_15 = arith.constant 0 : index
      %16 = vector.load %arg4[%c0_14, %c0_15] : memref<1x16xf32, #tpu.memory_space<vmem>>, vector<1x16xf32>
      %17 = vector.broadcast %16 : vector<1x16xf32> to vector<4x16xf32>
      %18 = arith.addf %15, %17 : vector<4x16xf32>
      %c0_16 = arith.constant 0 : index
      %c0_17 = arith.constant 0 : index
      %19 = vector.load %arg5[%c0_16, %c0_17] : memref<16x3xf32, #tpu.memory_space<vmem>>, vector<16x3xf32>
      %cst_18 = arith.constant dense<0.000000e+00> : vector<4x3xf32>
      %20 = tpu.matmul %18, %19, %cst_18 {dimension_numbers = #tpu.dot_dimension_numbers<[1], [0], [0], [1], [0, 0, 1, 1], [], []>, precision = #tpu.contract_precision<fp32>} : vector<4x16xf32>, vector<16x3xf32>, vector<4x3xf32> -> vector<4x3xf32>
      %c0_19 = arith.constant 0 : index
      %c0_20 = arith.constant 0 : index
      %21 = vector.load %arg6[%c0_19, %c0_20] : memref<1x3xf32, #tpu.memory_space<vmem>>, vector<1x3xf32>
      %22 = vector.broadcast %21 : vector<1x3xf32> to vector<4x3xf32>
      %23 = arith.addf %20, %22 : vector<4x3xf32>
      %cst_21 = arith.constant dense<0xFF800000> : vector<4xf32>
      %24 = vector.multi_reduction <maximumf>, %23, %cst_21 [1] : vector<4x3xf32> to vector<4xf32>
      %25 = vector.shape_cast %24 : vector<4xf32> to vector<4x1xf32>
      %26 = vector.broadcast %25 : vector<4x1xf32> to vector<4x3xf32>
      %27 = arith.subf %23, %26 : vector<4x3xf32>
      %28 = math.exp %27 : vector<4x3xf32>
      %cst_22 = arith.constant dense<0.000000e+00> : vector<4xf32>
      %29 = vector.multi_reduction <add>, %28, %cst_22 [1] : vector<4x3xf32> to vector<4xf32>
      %30 = vector.shape_cast %29 : vector<4xf32> to vector<4x1xf32>
      %31 = tpu.reciprocal %30 : vector<4x1xf32> -> vector<4x1xf32>
      %32 = vector.broadcast %31 : vector<4x1xf32> to vector<4x3xf32>
      %33 = arith.mulf %28, %32 : vector<4x3xf32>
      %c0_23 = arith.constant 0 : index
      %c0_24 = arith.constant 0 : index
      %34 = vector.load %arg7[%c0_23, %c0_24] : memref<4x3xf32, #tpu.memory_space<vmem>>, vector<4x3xf32>
      tpu.vector_store %arg7[%c0_23, %c0_24], %33 {strides = array<i32>} : memref<4x3xf32, #tpu.memory_space<vmem>>, vector<4x3xf32>,
    } else {
    }
    return
  }
  func.func @transform_0(%arg0: i32, %arg1: i32) -> (i32, i32, i32) {
    %c0_i32 = arith.constant 0 : i32
    %c0_i32_0 = arith.constant 0 : i32
    return %arg0, %c0_i32, %arg1 : i32, i32, i32
  }
  func.func @transform_1(%arg0: i32, %arg1: i32) -> (i32, i32) {
    %c0_i32 = arith.constant 0 : i32
    %c0_i32_0 = arith.constant 0 : i32
    %c0_i32_1 = arith.constant 0 : i32
    return %c0_i32, %c0_i32_0 : i32, i32
  }
  func.func @transform_2(%arg0: i32, %arg1: i32) -> (i32, i32) {
    %c0_i32 = arith.constant 0 : i32
    %c0_i32_0 = arith.constant 0 : i32
    %c0_i32_1 = arith.constant 0 : i32
    return %c0_i32, %c0_i32_0 : i32, i32
  }
  func.func @transform_3(%arg0: i32, %arg1: i32) -> (i32, i32) {
    %c0_i32 = arith.constant 0 : i32
    %c0_i32_0 = arith.constant 0 : i32
    %c0_i32_1 = arith.constant 0 : i32
    return %c0_i32, %c0_i32_0 : i32, i32
  }
  func.func @transform_4(%arg0: i32, %arg1: i32) -> (i32, i32) {
    %c0_i32 = arith.constant 0 : i32
    %c0_i32_0 = arith.constant 0 : i32
    %c0_i32_1 = arith.constant 0 : i32
    return %c0_i32, %c0_i32_0 : i32, i32
  }
  func.func @transform_5(%arg0: i32, %arg1: i32) -> (i32, i32) {
    %c0_i32 = arith.constant 0 : i32
    %c0_i32_0 = arith.constant 0 : i32
    return %arg0, %c0_i32 : i32, i32
  }
}

module attributes {stable_mosaic.version = 11 : i64} {
  func.func @_head_kernel(%arg0: i32, %arg1: i32, %arg2: memref<4x32x128xf32, #tpu.memory_space<vmem>>, %arg3: memref<32x16xf32, #tpu.memory_space<vmem>>, %arg4: memref<1x16xf32, #tpu.memory_space<vmem>>, %arg5: memref<16x3xf32, #tpu.memory_space<vmem>>, %arg6: memref<1x3xf32, #tpu.memory_space<vmem>>, %arg7: memref<4x3xf32, #tpu.memory_space<vmem>>, %arg8: memref<4x32xf32, #tpu.memory_space<vmem>>) attributes {dimension_semantics = [#tpu.dimension_semantics<parallel>, #tpu.dimension_semantics<arbitrary>], iteration_bounds = array<i64: 1, 8>, scalar_prefetch = 0 : i64, scratch_operands = 1 : i64, tpu.core_type = #tpu.core_type<tc>, window_params = [{transform_indices = @transform_0, window_bounds = array<i64: 4, 32, 128>}, {pipeline_mode = #tpu.pipeline_mode<synchronous>, transform_indices = @transform_1, window_bounds = array<i64: 32, 16>}, {pipeline_mode = #tpu.pipeline_mode<synchronous>, transform_indices = @transform_2, window_bounds = array<i64: 1, 16>}, {pipeline_mode = #tpu.pipeline_mode<synchronous>, transform_indices = @transform_3, window_bounds = array<i64: 16, 3>}, {pipeline_mode = #tpu.pipeline_mode<synchronous>, transform_indices = @transform_4, window_bounds = array<i64: 1, 3>}, {transform_indices = @transform_5, window_bounds = array<i64: 4, 3>}]} {
    %c0 = arith.constant 0 : index
    %c0_0 = arith.constant 0 : index
    %c0_1 = arith.constant 0 : index
    %0 = vector.load %arg2[%c0, %c0_0, %c0_1] : memref<4x32x128xf32, #tpu.memory_space<vmem>>, vector<4x32x128xf32>
    %cst = arith.constant dense<0.000000e+00> : vector<4x32xf32>
    %1 = vector.multi_reduction <add>, %0, %cst [2] : vector<4x32x128xf32> to vector<4x32xf32>
    %c0_i32 = arith.constant 0 : i32
    %2 = arith.cmpi eq, %arg1, %c0_i32 : i32
    %3 = arith.extui %2 : i1 to i32
    %c0_i32_2 = arith.constant 0 : i32
    %4 = arith.cmpi ne, %3, %c0_i32_2 : i32
    scf.if %4 {
      %cst_8 = arith.constant 0.000000e+00 : f32
      %11 = vector.broadcast %cst_8 : f32 to vector<4x32xf32>
      %c0_9 = arith.constant 0 : index
      %c0_10 = arith.constant 0 : index
      %12 = vector.load %arg8[%c0_9, %c0_10] : memref<4x32xf32, #tpu.memory_space<vmem>>, vector<4x32xf32>
      tpu.vector_store %arg8[%c0_9, %c0_10], %11 {strides = array<i32>} : memref<4x32xf32, #tpu.memory_space<vmem>>, vector<4x32xf32>,
    } else {
    }
    %c0_3 = arith.constant 0 : index
    %c0_4 = arith.constant 0 : index
    %5 = vector.load %arg8[%c0_3, %c0_4] : memref<4x32xf32, #tpu.memory_space<vmem>>, vector<4x32xf32>
    %6 = arith.addf %5, %1 : vector<4x32xf32>
    %c0_5 = arith.constant 0 : index
    %c0_6 = arith.constant 0 : index
    %7 = vector.load %arg8[%c0_5, %c0_6] : memref<4x32xf32, #tpu.memory_space<vmem>>, vector<4x32xf32>
    tpu.vector_store %arg8[%c0_5, %c0_6], %6 {strides = array<i32>} : memref<4x32xf32, #tpu.memory_space<vmem>>, vector<4x32xf32>,
    %c7_i32 = arith.constant 7 : i32
    %8 = arith.cmpi eq, %arg1, %c7_i32 : i32
    %9 = arith.extui %8 : i1 to i32
    %c0_i32_7 = arith.constant 0 : i32
    %10 = arith.cmpi ne, %9, %c0_i32_7 : i32
    scf.if %10 {
      %c0_8 = arith.constant 0 : index
      %c0_9 = arith.constant 0 : index
      %11 = vector.load %arg8[%c0_8, %c0_9] : memref<4x32xf32, #tpu.memory_space<vmem>>, vector<4x32xf32>
      %cst_10 = arith.constant 9.765625E-4 : f32
      %12 = vector.broadcast %cst_10 : f32 to vector<4x32xf32>
      %13 = arith.mulf %11, %12 : vector<4x32xf32>
      %c0_11 = arith.constant 0 : index
      %c0_12 = arith.constant 0 : index
      %14 = vector.load %arg3[%c0_11, %c0_12] : memref<32x16xf32, #tpu.memory_space<vmem>>, vector<32x16xf32>
      %cst_13 = arith.constant dense<0.000000e+00> : vector<4x16xf32>
      %15 = tpu.matmul %13, %14, %cst_13 {dimension_numbers = #tpu.dot_dimension_numbers<[1], [0], [0], [1], [0, 0, 1, 1], [], []>, precision = #tpu.contract_precision<fp32>} : vector<4x32xf32>, vector<32x16xf32>, vector<4x16xf32> -> vector<4x16xf32>
      %c0_14 = arith.constant 0 : index
      %c0_15 = arith.constant 0 : index
      %16 = vector.load %arg4[%c0_14, %c0_15] : memref<1x16xf32, #tpu.memory_space<vmem>>, vector<1x16xf32>
      %17 = vector.broadcast %16 : vector<1x16xf32> to vector<4x16xf32>
      %18 = arith.addf %15, %17 : vector<4x16xf32>
      %c0_16 = arith.constant 0 : index
      %c0_17 = arith.constant 0 : index
      %19 = vector.load %arg5[%c0_16, %c0_17] : memref<16x3xf32, #tpu.memory_space<vmem>>, vector<16x3xf32>
      %cst_18 = arith.constant dense<0.000000e+00> : vector<4x3xf32>
      %20 = tpu.matmul %18, %19, %cst_18 {dimension_numbers = #tpu.dot_dimension_numbers<[1], [0], [0], [1], [0, 0, 1, 1], [], []>, precision = #tpu.contract_precision<fp32>} : vector<4x16xf32>, vector<16x3xf32>, vector<4x3xf32> -> vector<4x3xf32>
      %c0_19 = arith.constant 0 : index
      %c0_20 = arith.constant 0 : index
      %21 = vector.load %arg6[%c0_19, %c0_20] : memref<1x3xf32, #tpu.memory_space<vmem>>, vector<1x3xf32>
      %22 = vector.broadcast %21 : vector<1x3xf32> to vector<4x3xf32>
      %23 = arith.addf %20, %22 : vector<4x3xf32>
      %cst_21 = arith.constant dense<0xFF800000> : vector<4xf32>
      %24 = vector.multi_reduction <maximumf>, %23, %cst_21 [1] : vector<4x3xf32> to vector<4xf32>
      %25 = vector.shape_cast %24 : vector<4xf32> to vector<4x1xf32>
      %26 = vector.broadcast %25 : vector<4x1xf32> to vector<4x3xf32>
      %27 = arith.subf %23, %26 : vector<4x3xf32>
      %28 = math.exp %27 : vector<4x3xf32>
      %cst_22 = arith.constant dense<0.000000e+00> : vector<4xf32>
      %29 = vector.multi_reduction <add>, %28, %cst_22 [1] : vector<4x3xf32> to vector<4xf32>
      %30 = vector.shape_cast %29 : vector<4xf32> to vector<4x1xf32>
      %31 = tpu.reciprocal %30 : vector<4x1xf32> -> vector<4x1xf32>
      %32 = vector.broadcast %31 : vector<4x1xf32> to vector<4x3xf32>
      %33 = arith.mulf %28, %32 : vector<4x3xf32>
      %c0_23 = arith.constant 0 : index
      %c0_24 = arith.constant 0 : index
      %34 = vector.load %arg7[%c0_23, %c0_24] : memref<4x3xf32, #tpu.memory_space<vmem>>, vector<4x3xf32>
      tpu.vector_store %arg7[%c0_23, %c0_24], %33 {strides = array<i32>} : memref<4x3xf32, #tpu.memory_space<vmem>>, vector<4x3xf32>,
    } else {
    }
    return
  }
  func.func @transform_0(%arg0: i32, %arg1: i32) -> (i32, i32, i32) {
    %c0_i32 = arith.constant 0 : i32
    %c0_i32_0 = arith.constant 0 : i32
    return %arg0, %c0_i32, %arg1 : i32, i32, i32
  }
  func.func @transform_1(%arg0: i32, %arg1: i32) -> (i32, i32) {
    %c0_i32 = arith.constant 0 : i32
    %c0_i32_0 = arith.constant 0 : i32
    %c0_i32_1 = arith.constant 0 : i32
    return %c0_i32, %c0_i32_0 : i32, i32
  }
  func.func @transform_2(%arg0: i32, %arg1: i32) -> (i32, i32) {
    %c0_i32 = arith.constant 0 : i32
    %c0_i32_0 = arith.constant 0 : i32
    %c0_i32_1 = arith.constant 0 : i32
    return %c0_i32, %c0_i32_0 : i32, i32
  }
  func.func @transform_3(%arg0: i32, %arg1: i32) -> (i32, i32) {
    %c0_i32 = arith.constant 0 : i32
    %c0_i32_0 = arith.constant 0 : i32
    %c0_i32_1 = arith.constant 0 : i32
    return %c0_i32, %c0_i32_0 : i32, i32
  }
  func.func @transform_4(%arg0: i32, %arg1: i32) -> (i32, i32) {
    %c0_i32 = arith.constant 0 : i32
    %c0_i32_0 = arith.constant 0 : i32
    %c0_i32_1 = arith.constant 0 : i32
    return %c0_i32, %c0_i32_0 : i32, i32
  }
  func.func @transform_5(%arg0: i32, %arg1: i32) -> (i32, i32) {
    %c0_i32 = arith.constant 0 : i32
    %c0_i32_0 = arith.constant 0 : i32
    return %arg0, %c0_i32 : i32, i32
  }
}

</mosaic_0001>

<bundles_post_ra>
// kernel: tpu_custom_call.1
= control target key start
LH: loop header
LB: loop body
LE: loop exit
PB: predicated region body
PF: predicated region fallthrough
CT: control target
= control target key end

     0   :  { %10 = vsyncpa [#allocation4], 0  ;;  %s2132_s0 = inlined_call_operand.hbm [shape: f32[4,32,1024], index: 0, kind: input, shape index: {}]   ;;  %s2133_s1 = inlined_call_operand.vmem [shape: f32[32,16], index: 1, kind: input, shape index: {}]   ;;  %s2134_s2 = inlined_call_operand.vmem [shape: f32[1,16], index: 2, kind: input, shape index: {}]   ;;  %s2135_s3 = inlined_call_operand.vmem [shape: f32[16,3], index: 3, kind: input, shape index: {}]   ;;  %s2136_s4 = inlined_call_operand.vmem [shape: f32[1,3], index: 4, kind: input, shape index: {}]   ;;  %s2137_s5 = inlined_call_operand.hbm [shape: f32[4,3], index: 5, kind: output, shape index: {}]  }
   0x1   :  { %12 = vsyncpa [#allocation4 + $0x1], 0 }
   0x2   :  { %13 = vsyncpa [#allocation5], 0  ;;  %s1870_s18 = smov 0   ;;  %s1872_s19 = smov 0  }
   0x3   :  { %s1874_s20 = smov 0   ;;  %s1876_s21 = smov 0  }
   0x4   :  { %s1878_s22 = smov 0   ;;  %s1880_s23 = smov 0  }
   0x5 LB: > { %s1481_s24 = sadd.s32 4294967295, %s1830_s23   ;;  %s28_s25 = sadd.s32 1, %s1826_s22  ;;  %s1830_s23 = sphi %s1880_s23, %s19_s23   ;;  %s1826_s22 = sphi %s1878_s22, %s2146_s22   ;;  %s1822_s21 = sphi %s1876_s21, %s2145_s21   ;;  %s1818_s20 = sphi %s1874_s20, %s2144_s20   ;;  %s1814_s19 = sphi %s1872_s19, %s2143_s19   ;;  %s1810_s18 = sphi %s1870_s18, %s2142_s18  }
   0x6   : > { %p29_p0 = scmp.ge.s32.totalorder %s28_s25, 8  ;;  %s40_s26 = sadd.s32 1, %s1818_s20 }
   0x7   : > { %p47_p1 = scmp.ne.s32.totalorder %s1818_s20, %s1814_s19  ;;  %p48_p2 = scmp.eq.s32.totalorder %s1830_s23, 0 }
   0x8   : > { %s2148_s25 = smov (%p29_p0, %s28_s25), 0  ;;  %p53_p4 = scmp.ne.s32.totalorder %s1814_s19, %s1810_s18 }
   0x9   : > { %p1906_p3 = por %p48_p2, %p47_p1  ;;  %s36_s28 = ssub.s32 %s1826_s22, %s2148_s25 }
   0xa   : > { %p54_p5 = scmp.eq.s32.totalorder %s1481_s24, 0  ;;  %p38_p6 = scmp.eq.s32.totalorder %s36_s28, 0 }
   0xb   : > { %p1662_p8 = scmp.lt.s32.totalorder %s1830_s23, 8  ;;  %s199_s6 = sand.u32 1, %s1818_s20  }
   0xc   : > { %p1915_p7 = por %p54_p5, %p53_p4  ;;  %s1485_s7 = sshll.u32 %s1826_s22, 7 }
   0xd   : > { %s1921_s30 = scalar_select %p38_p6, %s1818_s20, %s40_s26  }
   0xe   : > { %s1484_s8 = sshll.u32 %s199_s6, 7  ;;  %s211_s11 = scalar_lea.hbm %s2132_s0, %s1485_s7 }
   0xf   : > { %s203_s12 = scalar_lea.vmem [#allocation3], %s1484_s8  ;;  %p1930_p9 = pnand %p1662_p8, %p1906_p3 }
  0x10   : > { %s212_s13 = sshll.u32 %s203_s12, 4  ;;  %p1486_p10 = scmp.ge.s32.totalorder %s1830_s23, 1  ;;  %s213_s13 = int_to_ptr.vmem [resolvable:$true] %s212_s13 }
  0x11   : > { %s200_s15 = scalar_lea.sflag [#allocation4], %s199_s6  ;;  %p1726_p11 = pneg %p1930_p9 }
  0x12   : > { %s1737_s16 = scalar_lea.vmem %s213_s13, 2048  ;;  %s1832_s17 = smov [#allocation3]  }
  0x13   : > { %p1738_p12 = scmp.ne.s32.totalorder %s213_s13, %s1737_s16  ;;  %s1742_s18 = sshll.u32 %s1832_s17, 4  ;;  %s1743_s18 = int_to_ptr.vmem [resolvable:$false] %s1742_s18 }
  0x14   : > { %s1744_s26 = scalar_lea.vmem %s1743_s18, 4096  ;;  %p1745_p1 = scmp.lt.s32.totalorder %s213_s13, %s1743_s18 }
  0x15   : > { %p1740_p13 = pnand %p1738_p12, %p1726_p11  ;;  %p1746_p2 = scmp.lt.s32.totalorder %s1744_s26, %s1737_s16 }
  0x17   : > { %p1741_p0 = pneg %p1740_p13  ;;  %p1747_p3 = por %p1746_p2, %p1745_p1 }
  0x19   : > { %p1748_p4 = pnand %p1747_p3, %p1741_p0 }
  0x1b   : > { %1751 = shalt.err (!%p1748_p4)
}
  0x1c   : > { %s1833_s27 = smov 1024   ;;  %s1834_s28 = smov 128  }
  0x1d   : > { %s1835_s6 = smov 8   ;;  %p220_p5 = scmp.lt.s32.totalorder %s1830_s23, 9 }
  0x1e   : > { %1661 = dma.hbm_to_vmem [thread:$0]  (!%p1930_p9), %s211_s11, 2048, %s213_s13, %s200_s15, %s1833_s27, %s1834_s28, %s1835_s6  }
  0x1f   : > { %p221_p6 = pnand %p1486_p10, %p220_p5 }
  0x20   : > { %s226_s7 = sand.u32 (!%p221_p6), 1, %s1814_s19  }
  0x21   : > { %224 = sbr.rel (%p221_p6) target bundleno = 1006 (0x3ee), region = 40  ;;  %s1487_s8 = sshll.u32 (!%p221_p6), %s226_s7, 7 }
  0x22   : > { %s227_s9 = scalar_lea.sflag (!%p221_p6), [#allocation4], %s226_s7  ;;  %s1943_s10 = scalar_lea.vmem (!%p221_p6), [#allocation3], %s1487_s8 }
  0x26   : > { %1801 = dma.done.wait (%p1915_p7), %s227_s9, 2048  }
  0x27   : > { %1803 = vsyncadd (%p1915_p7), %s227_s9, 4294965248  ;;  %v255_v0 = vld [vmem:[%s1943_s10 + $0x10] sm:$0xff]  ;;  %v253_v1 = vld [vmem:[%s1943_s10] sm:$0xff]  ;;  %p1488_p7 = scmp.ne.s32.totalorder %s1822_s21, 0 }
  0x28   : > { %273 = vadd.xlane.f32.xlu1 %v255_v0  ;;  %269 = vadd.xlane.f32.xlu0 %v253_v1  ;;  %v256_v2 = vld [vmem:[%s1943_s10 + $0x18] sm:$0xff]  ;;  %v254_v3 = vld [vmem:[%s1943_s10 + $0x8] sm:$0xff]  ;;  %v257_v5 = vld [vmem:[%s1943_s10 + $0x20] sm:$0xff] }
  0x29   : > { %v258_v4 = vld [vmem:[%s1943_s10 + $0x28] sm:$0xff]  ;;  %v260_v6 = vld [vmem:[%s1943_s10 + $0x38] sm:$0xff]  ;;  %v259_v7 = vld [vmem:[%s1943_s10 + $0x30] sm:$0xff] }
  0x2a   : > { %v262_v8 = vld [vmem:[%s1943_s10 + $0x48] sm:$0xff]  ;;  %v261_v9 = vld [vmem:[%s1943_s10 + $0x40] sm:$0xff]  ;;  %v264_v10 = vld [vmem:[%s1943_s10 + $0x58] sm:$0xff] }
  0x2b   : > { %v263_v11 = vld [vmem:[%s1943_s10 + $0x50] sm:$0xff]  ;;  %v266_v12 = vld [vmem:[%s1943_s10 + $0x68] sm:$0xff]  ;;  %v265_v13 = vld [vmem:[%s1943_s10 + $0x60] sm:$0xff] }
  0x2c   : > { %275 = vadd.xlane.f32.xlu1 %v256_v2  ;;  %271 = vadd.xlane.f32.xlu0 %v254_v3  ;;  %v268_v14 = vld [vmem:[%s1943_s10 + $0x78] sm:$0xff]  ;;  %v267_v15 = vld [vmem:[%s1943_s10 + $0x70] sm:$0xff] }
  0x30   : > { %279 = vadd.xlane.f32.xlu1 %v258_v4  ;;  %277 = vadd.xlane.f32.xlu0 %v257_v5 }
  0x34   : > { %283 = vadd.xlane.f32.xlu1 %v260_v6  ;;  %281 = vadd.xlane.f32.xlu0 %v259_v7 }
  0x38   : > { %287 = vadd.xlane.f32.xlu1 %v262_v8  ;;  %285 = vadd.xlane.f32.xlu0 %v261_v9 }
  0x3c   : > { %291 = vadd.xlane.f32.xlu1 %v264_v10  ;;  %289 = vadd.xlane.f32.xlu0 %v263_v11 }
  0x40   : > { %295 = vadd.xlane.f32.xlu1 %v266_v12  ;;  %293 = vadd.xlane.f32.xlu0 %v265_v13 }
  0x44   : > { %299 = vadd.xlane.f32.xlu1 %v268_v14  ;;  %297 = vadd.xlane.f32.xlu0 %v267_v15 }
  0xb1   : > { %v274_v16 = vpop.xlane.xlu1 %273  ;;  %v270_v17 = vpop.xlane.xlu0 %269 }
  0xb5   : > { %v276_v18 = vpop.xlane.xlu1 %275  ;;  %v272_v19 = vpop.xlane.xlu0 %271 }
  0xb9   : > { %v280_v20 = vpop.xlane.xlu1 %279  ;;  %v278_v21 = vpop.xlane.xlu0 %277 }
  0xbd   : > { %v284_v22 = vpop.xlane.xlu1 %283  ;;  %v282_v23 = vpop.xlane.xlu0 %281 }
  0xc1   : > { %v288_v24 = vpop.xlane.xlu1 %287  ;;  %v286_v25 = vpop.xlane.xlu0 %285 }
  0xc5   : > { %v292_v26 = vpop.xlane.xlu1 %291  ;;  %v290_v27 = vpop.xlane.xlu0 %289 }
  0xc9   : > { %v296_v28 = vpop.xlane.xlu1 %295  ;;  %v294_v29 = vpop.xlane.xlu0 %293  ;;  %304 = sbr.rel (%p1488_p7) target bundleno = 208 (0xd0), region = 48 }
  0xcd   : > { %v300_v30 = vpop.xlane.xlu1 %299  ;;  %v298_v31 = vpop.xlane.xlu0 %297 }
  0xce   : > { %vm305_vm0 = vcmask 257024   ;;  %v1836_v32 = vmov 0.0  }
  0xcf   : > { %306 = vst.msk [vmem:[#allocation2] sm:$0xf] %vm305_vm0, %v1836_v32 }
  0xd0 PF: > { %v324_v33 = vlaneseq  ;;  %vm335_vm1 = vcmask 130112   ;;  %vm342_vm2 = vcmask 195712   ;;  %vm349_vm3 = vcmask 261312   ;;  %p1489_p8 = scmp.ne.s32.totalorder %s1822_s21, 7 }
  0xd1   : > { %vm408_vm4 = vcmask 1041409   ;;  %vm410_vm5 = vcmask 1042434   ;;  %vm412_vm6 = vcmask 1043459   ;;  %vm416_vm7 = vcmask 257024  }
  0xd2   : > { %v325_v34 = vand.u32 127, %v324_v33  ;;  %v327_v35 = vshrl.u32 %v324_v33, 7 }
  0xd4   : > { %v328_v36 = vsub.s32 %v325_v34, %v327_v35  ;;  %v330_v37 = vadd.s32 4294967288, %v325_v34  ;;  %v337_v38 = vadd.s32 4294967280, %v325_v34  ;;  %v344_v39 = vadd.s32 4294967272, %v325_v34 }
  0xd6   : > { %v329_v40 = vrot.slane %v270_v17, %v328_v36  ;;  %v333_v41 = vsub.s32 %v330_v37, %v327_v35  ;;  %v340_v42 = vsub.s32 %v337_v38, %v327_v35  ;;  %v347_v43 = vsub.s32 %v344_v39, %v327_v35  ;;  %v307_v7 = vld [vmem:[#allocation2] sm:$0xf] }
  0xd7   : > { %v354_v44 = vrot.slane %v278_v21, %v328_v36  ;;  %v373_v45 = vrot.slane %v286_v25, %v328_v36  ;;  %v392_v46 = vrot.slane %v294_v29, %v328_v36 }
  0xd8   : > { %v334_v47 = vrot.slane %v272_v19, %v333_v41  ;;  %v341_v48 = vrot.slane %v274_v16, %v340_v42  ;;  %v348_v49 = vrot.slane %v276_v18, %v347_v43  ;;  %v358_v50 = vrot.slane %v280_v20, %v333_v41 }
  0xd9   : > { %v363_v51 = vrot.slane %v282_v23, %v340_v42  ;;  %v368_v52 = vrot.slane %v284_v22, %v347_v43  ;;  %v377_v53 = vrot.slane %v288_v24, %v333_v41  ;;  %v382_v54 = vrot.slane %v290_v27, %v340_v42 }
  0xda   : > { %v336_v55 = vsel %vm335_vm1, %v334_v47, %v329_v40  ;;  %v359_v56 = vsel %vm335_vm1, %v358_v50, %v354_v44  ;;  %v387_v57 = vrot.slane %v292_v26, %v347_v43  ;;  %v396_v58 = vrot.slane %v296_v28, %v333_v41 }
  0xdb   : > { %v343_v59 = vsel %vm342_vm2, %v341_v48, %v336_v55  ;;  %v364_v60 = vsel %vm342_vm2, %v363_v51, %v359_v56  ;;  %v378_v61 = vsel %vm335_vm1, %v377_v53, %v373_v45  ;;  %v401_v62 = vrot.slane %v298_v31, %v340_v42 }
  0xdc   : > { %v350_v63 = vsel %vm349_vm3, %v348_v49, %v343_v59  ;;  %v369_v0 = vsel %vm349_vm3, %v368_v52, %v364_v60  ;;  %v383_v1 = vsel %vm342_vm2, %v382_v54, %v378_v61  ;;  %v397_v2 = vsel %vm335_vm1, %v396_v58, %v392_v46 }
  0xdd   : > { %v388_v3 = vsel %vm349_vm3, %v387_v57, %v383_v1  ;;  %v402_v4 = vsel %vm342_vm2, %v401_v62, %v397_v2  ;;  %v406_v5 = vrot.slane %v300_v30, %v347_v43  ;;  %v409_v6 = vsel %vm408_vm4, %v369_v0, %v350_v63 }
  0xde   : > { %v411_v8 = vsel %vm410_vm5, %v388_v3, %v409_v6 }
  0xdf   : > { %v407_v9 = vsel %vm349_vm3, %v406_v5, %v402_v4  ;;  %421 = sbr.rel (%p1489_p8) target bundleno = 991 (0x3df), region = 52 }
  0xe0   : > { %v413_v10 = vsel %vm412_vm6, %v407_v9, %v411_v8 }
  0xe1   : > { %v415_v11 = vadd.f32 %v413_v10, %v307_v7 }
  0xe3   : > { %417 = vst.msk [vmem:[#allocation2] sm:$0xf] %vm416_vm7, %v415_v11 }
  0xe4   : > { %v427_v12 = vld [vmem:[%s2133_s1 + $0x18] sm:$0xff]  ;;  %v426_v13 = vld [vmem:[%s2133_s1 + $0x10] sm:$0xff]  ;;  %v425_v14 = vld [vmem:[%s2133_s1 + $0x8] sm:$0xff]  ;;  %vm435_vm8 = vcmask 261120   ;;  %v1837_v15 = vmov 0.0   ;;  %vm1838_vm9 = vmmov 0  }
  0xe5   : > { %1544 = vmatprep.subr.mxu0 %v1837_v15  ;;  %v1992_v16 = vand.u32 4294901760, %v427_v12  ;;  %v1994_v17 = vand.u32 4294901760, %v426_v13  ;;  %v1996_v18 = vand.u32 4294901760, %v425_v14  ;;  %1555 = vmatprep.subr.mxu1 %v1837_v15  ;;  %v424_v19 = vld [vmem:[%s2133_s1] sm:$0xff]  ;;  %v925_v45 = vld [vmem:[%s2135_s3 + $0x8] sm:$0xff]  ;;  %vm933_vm10 = vcmask 130048  }
  0xe6   : > { %v2002_v21 = vand.u32 4294901760, %v424_v19  ;;  %1552 = vmatprep.mubr.msk.f32.mxu0 %vm1838_vm9, %v1837_v15  ;;  %1563 = vmatprep.mubr.msk.f32.mxu1 %vm1838_vm9, %v1837_v15  ;;  %v966_v46 = vand.u32 4294901760, %v925_v45  ;;  %v924_v47 = vld [vmem:[%s2135_s3] sm:$0xff]  ;;  %vm1396_vm11 = vcmask 19456  }
  0xe7   : > { %1545 = vmatpush3.msra.mxu0 %v1992_v16  ;;  %v544_v23 = vsub.f32 %v427_v12, %v1992_v16  ;;  %v551_v24 = vsub.f32 %v426_v13, %v1994_v17  ;;  %v558_v25 = vsub.f32 %v425_v14, %v1996_v18  ;;  %v969_v49 = vand.u32 4294901760, %v924_v47  ;;  %v1490_v60 = vld [vmem:[%s2134_s2] ss:$0 sm:$0xff] }
  0xe8   : > { %1546 = vmatprep.subr.mxu0 %v1837_v15  ;;  %v565_v27 = vsub.f32 %v424_v19, %v2002_v21  ;;  %v1044_v48 = vsub.f32 %v925_v45, %v966_v46 }
  0xe9   : > { %1547 = vmatpush3.msra.mxu0 %v1994_v17  ;;  %v545_v28 = vand.u32 4294901760, %v544_v23  ;;  %v552_v29 = vand.u32 4294901760, %v551_v24  ;;  %v559_v31 = vand.u32 4294901760, %v558_v25  ;;  %v1051_v51 = vsub.f32 %v924_v47, %v969_v49 }
  0xea   : > { %v422_v20 = vld [vmem:[#allocation2] sm:$0xf]  ;;  %1548 = vmatprep.subr.mxu0 %v1837_v15  ;;  %v566_v32 = vand.u32 4294901760, %v565_v27  ;;  %v1045_v50 = vand.u32 4294901760, %v1044_v48 }
  0xeb   : > { %v423_v22 = vmul.f32 0.0009765625, %v422_v20  ;;  %1549 = vmatpush3.msra.mxu0 %v1996_v18  ;;  %v546_v33 = vsub.f32 %v544_v23, %v545_v28  ;;  %v553_v34 = vsub.f32 %v551_v24, %v552_v29  ;;  %v560_v36 = vsub.f32 %v558_v25, %v559_v31 }
  0xec   : > { %1550 = vmatprep.subr.mxu0 %v1837_v15  ;;  %v567_v40 = vsub.f32 %v565_v27, %v566_v32  ;;  %v1046_v52 = vsub.f32 %v1044_v48, %v1045_v50  ;;  %v1052_v53 = vand.u32 4294901760, %v1051_v51 }
  0xed   : > { %v437_v26 = vsel %vm435_vm8, %v423_v22, 0  ;;  %v547_v37 = vand.u32 4294901760, %v546_v33  ;;  %1551 = vmatpush3.msra.mxu0 %v2002_v21  ;;  %v554_v38 = vand.u32 4294901760, %v553_v34  ;;  %v561_v42 = vand.u32 4294901760, %v560_v36 }
  0xee   : > { %v2016_v30 = vand.u32 4294901760, %v437_v26  ;;  %1566 = vmatprep.subr.mxu0 %v1837_v15  ;;  %v568_v44 = vand.u32 4294901760, %v567_v40  ;;  %v1047_v54 = vand.u32 4294901760, %v1046_v52  ;;  %v1053_v55 = vsub.f32 %v1051_v51, %v1052_v53 }
  0xef   : > { %1556 = vmatpush3.msra.mxu1 %v547_v37 }
  0xf0   : > { %v509_v35 = vsub.f32 %v437_v26, %v2016_v30  ;;  %1557 = vmatprep.subr.mxu1 %v1837_v15  ;;  %v1054_v56 = vand.u32 4294901760, %v1053_v55 }
  0xf1   : > { %1558 = vmatpush3.msra.mxu1 %v554_v38 }
  0xf2   : > { %v510_v39 = vand.u32 4294901760, %v509_v35  ;;  %1559 = vmatprep.subr.mxu1 %v1837_v15 }
  0xf3   : > { %1560 = vmatpush3.msra.mxu1 %v561_v42 }
  0xf4   : > { %v511_v41 = vsub.f32 %v509_v35, %v510_v39  ;;  %1561 = vmatprep.subr.mxu1 %v1837_v15 }
  0xf5   : > { %1562 = vmatpush3.msra.mxu1 %v568_v44 }
  0xf6   : > { %v512_v43 = vand.u32 4294901760, %v511_v41  ;;  %1564 = vmatmul.mubr.f32.vlgmr.msra.gmra.mxu1 %v2016_v30  ;;  %1577 = vmatprep.subr.mxu1 %v1837_v15 }
  0xf7   : > { %1578 = vmatpush3.msra.mxu1 %v1992_v16  ;;  %1585 = vmatprep.mubr.msk.f32.mxu1 %vm1838_vm9, %v1837_v15 }
  0xf8   : > { %1553 = vmatmul.mubr.f32.vlgmr.msra.gmra.mxu0 %v512_v43  ;;  %1579 = vmatprep.subr.mxu1 %v1837_v15 }
  0xf9   : > { %1567 = vmatpush3.msra.mxu0 %v544_v23  ;;  %1574 = vmatprep.mubr.msk.f32.mxu0 %vm1838_vm9, %v1837_v15  ;;  %v1491_v23 = vld [vmem:[%s2136_s4] ss:$0 sm:$0xff] }
  0xfa   : > { %1568 = vmatprep.subr.mxu0 %v1837_v15  ;;  %1580 = vmatpush3.msra.mxu1 %v1994_v17 }
  0xfb   : > { %1569 = vmatpush3.msra.mxu0 %v551_v24  ;;  %1581 = vmatprep.subr.mxu1 %v1837_v15 }
  0xfc   : > { %1570 = vmatprep.subr.mxu0 %v1837_v15  ;;  %1582 = vmatpush3.msra.mxu1 %v1996_v18 }
  0xfd   : > { %1571 = vmatpush3.msra.mxu0 %v558_v25  ;;  %1583 = vmatprep.subr.mxu1 %v1837_v15 }
  0xfe   : > { %1572 = vmatprep.subr.mxu0 %v1837_v15  ;;  %1584 = vmatpush3.msra.mxu1 %v2002_v21 }
  0xff   : > { %1573 = vmatpush3.msra.mxu0 %v565_v27  ;;  %1586 = vmatmul.mubr.f32.vlgmr.msra.gmra.mxu1 %v510_v39 }
 0x100   : > { %1575 = vmatmul.mubr.f32.vlgmr.msra.gmra.mxu0 %v509_v35  ;;  %1588 = vmatprep.subr.mxu0 %v1837_v15 }
 0x101   : > { %1589 = vmatpush3.msra.mxu0 %v545_v28  ;;  %1599 = vmatprep.subr.mxu1 %v1837_v15 }
 0x102   : > { %1590 = vmatprep.subr.mxu0 %v1837_v15  ;;  %1600 = vmatpush3.msra.mxu1 %v1992_v16 }
 0x103   : > { %1591 = vmatpush3.msra.mxu0 %v552_v29  ;;  %1596 = vmatprep.mubr.msk.f32.mxu0 %vm1838_vm9, %v1837_v15 }
 0x104   : > { %1592 = vmatprep.subr.mxu0 %v1837_v15  ;;  %1601 = vmatprep.subr.mxu1 %v1837_v15 }
 0x105   : > { %1593 = vmatpush3.msra.mxu0 %v559_v31  ;;  %1602 = vmatpush3.msra.mxu1 %v1994_v17 }
 0x106   : > { %1594 = vmatprep.subr.mxu0 %v1837_v15  ;;  %1603 = vmatprep.subr.mxu1 %v1837_v15 }
 0x107   : > { %1595 = vmatpush3.msra.mxu0 %v566_v32  ;;  %1607 = vmatprep.mubr.msk.f32.mxu1 %vm1838_vm9, %v1837_v15 }
 0x108   : > { %1597 = vmatmul.mubr.f32.vlgmr.msra.gmra.mxu0 %v2016_v30  ;;  %1604 = vmatpush3.msra.mxu1 %v1996_v18 }
 0x109   : > { %1610 = vmatprep.subr.mxu0 %v1837_v15  ;;  %1605 = vmatprep.subr.mxu1 %v1837_v15 }
 0x10a   : > { %1614 = vmatprep.mubr.msk.f32.mxu0 %vm1838_vm9, %v1837_v15  ;;  %1606 = vmatpush3.msra.mxu1 %v2002_v21 }
 0x10b   : > { %1608 = vmatmul.mubr.f32.vlgmr.msra.gmra.mxu1 %v2016_v30  ;;  %1617 = vmatprep.subr.mxu1 %v1837_v15 }
 0x10c   : > { %1621 = vmatprep.mubr.msk.f32.mxu1 %vm1838_vm9, %v1837_v15  ;;  %1611 = vmatpush3.msra.mxu0 %v966_v46 }
 0x10d   : > { %1612 = vmatprep.subr.mxu0 %v1837_v15  ;;  %1618 = vmatpush3.msra.mxu1 %v1047_v54 }
 0x10e   : > { %1613 = vmatpush3.msra.mxu0 %v969_v49  ;;  %1619 = vmatprep.subr.mxu1 %v1837_v15 }
 0x10f   : > { %1624 = vmatprep.subr.mxu0 %v1837_v15  ;;  %1620 = vmatpush3.msra.mxu1 %v1054_v56 }
 0x110   : > { %1631 = vmatprep.subr.mxu1 %v1837_v15 }
 0x1b6   : > { %v605_v59 = vpop.f32.mrf.mxu1 }
 0x1b8   : > { %v514_v57 = vpop.f32.mrf.mxu0  ;;  %v1565_v61 = vpop.f32.mrf.mxu1 }
 0x1b9   : > { %v515_v62 = vadd.f32 %v1490_v60, %v514_v57 }
 0x1ba   : > { %v1554_v58 = vpop.f32.mrf.mxu0 }
 0x1bb   : > { %v606_v1 = vadd.f32 %v605_v59, %v515_v62 }
 0x1bf   : > { %v762_v2 = vpop.f32.mrf.mxu1 }
 0x1c0   : > { %v685_v63 = vpop.f32.mrf.mxu0 }
 0x1c1   : > { %v686_v3 = vadd.f32 %v685_v63, %v606_v1  ;;  %v1587_v4 = vpop.f32.mrf.mxu1 }
 0x1c2   : > { %v1576_v0 = vpop.f32.mrf.mxu0 }
 0x1c3   : > { %v763_v5 = vadd.f32 %v762_v2, %v686_v3 }
 0x1c8   : > { %v845_v6 = vpop.f32.mrf.mxu0 }
 0x1c9   : > { %v846_v8 = vadd.f32 %v845_v6, %v763_v5 }
 0x1ca   : > { %v1598_v7 = vpop.f32.mrf.mxu0 }
 0x1cb   : > { %v920_v9 = vpop.f32.mrf.mxu1 }
 0x1cc   : > { %v921_v10 = vadd.f32 %v920_v9, %v846_v8 }
 0x1cd   : > { %v1609_v11 = vpop.f32.mrf.mxu1 }
 0x1ce   : > { %v935_v12 = vsel %vm933_vm10, %v921_v10, 0 }
 0x1cf   : > { %v1004_v13 = vand.u32 4294901760, %v935_v12 }
 0x1d1   : > { %v1005_v14 = vsub.f32 %v935_v12, %v1004_v13  ;;  %1622 = vmatmul.mubr.f32.vlgmr.msra.gmra.mxu1 %v1004_v13 }
 0x1d2   : > { %1632 = vmatpush3.msra.mxu1 %v966_v46  ;;  %1635 = vmatprep.mubr.msk.f32.mxu1 %vm1838_vm9, %v1837_v15 }
 0x1d3   : > { %1633 = vmatprep.subr.mxu1 %v1837_v15  ;;  %v1006_v16 = vand.u32 4294901760, %v1005_v14 }
 0x1d4   : > { %1634 = vmatpush3.msra.mxu1 %v969_v49 }
 0x1d5   : > { %1636 = vmatmul.mubr.f32.vlgmr.msra.gmra.mxu1 %v1006_v16  ;;  %1645 = vmatprep.subr.mxu1 %v1837_v15  ;;  %v1007_v17 = vsub.f32 %v1005_v14, %v1006_v16 }
 0x1d6   : > { %1646 = vmatpush3.msra.mxu1 %v966_v46  ;;  %1649 = vmatprep.mubr.msk.f32.mxu1 %vm1838_vm9, %v1837_v15 }
 0x1d7   : > { %1647 = vmatprep.subr.mxu1 %v1837_v15  ;;  %v1008_v18 = vand.u32 4294901760, %v1007_v17 }
 0x1d8   : > { %1648 = vmatpush3.msra.mxu1 %v969_v49 }
 0x1d9   : > { %1615 = vmatmul.mubr.f32.vlgmr.msra.gmra.mxu0 %v1008_v18  ;;  %1650 = vmatmul.mubr.f32.vlgmr.msra.gmra.mxu1 %v1004_v13 }
 0x1da   : > { %1625 = vmatpush3.msra.mxu0 %v1044_v48  ;;  %1628 = vmatprep.mubr.msk.f32.mxu0 %vm1838_vm9, %v1837_v15 }
 0x1db   : > { %1626 = vmatprep.subr.mxu0 %v1837_v15 }
 0x1dc   : > { %1627 = vmatpush3.msra.mxu0 %v1051_v51 }
 0x1dd   : > { %1638 = vmatprep.subr.mxu0 %v1837_v15  ;;  %1629 = vmatmul.mubr.f32.vlgmr.msra.gmra.mxu0 %v1005_v14 }
 0x1de   : > { %1639 = vmatpush3.msra.mxu0 %v1045_v50  ;;  %1642 = vmatprep.mubr.msk.f32.mxu0 %vm1838_vm9, %v1837_v15 }
 0x1df   : > { %1640 = vmatprep.subr.mxu0 %v1837_v15 }
 0x1e0   : > { %1641 = vmatpush3.msra.mxu0 %v1052_v53 }
 0x1e1   : > { %1643 = vmatmul.mubr.f32.vlgmr.msra.gmra.mxu0 %v1004_v13 }
 0x291   : > { %v1091_v19 = vpop.f32.mrf.mxu1 }
 0x293   : > { %v1623_v20 = vpop.f32.mrf.mxu1 }
 0x295   : > { %v1242_v21 = vpop.f32.mrf.mxu1 }
 0x297   : > { %v1637_v22 = vpop.f32.mrf.mxu1 }
 0x299   : > { %v1010_v24 = vpop.f32.mrf.mxu0  ;;  %v1392_v25 = vpop.f32.mrf.mxu1 }
 0x29a   : > { %v1011_v26 = vadd.f32 %v1491_v23, %v1010_v24 }
 0x29b   : > { %v1616_v27 = vpop.f32.mrf.mxu0  ;;  %v1651_v28 = vpop.f32.mrf.mxu1 }
 0x29c   : > { %v1092_v29 = vadd.f32 %v1091_v19, %v1011_v26 }
 0x29d   : > { %v1167_v30 = vpop.f32.mrf.mxu0 }
 0x29e   : > { %v1168_v31 = vadd.f32 %v1167_v30, %v1092_v29 }
 0x29f   : > { %v1630_v32 = vpop.f32.mrf.mxu0 }
 0x2a0   : > { %v1243_v15 = vadd.f32 %v1242_v21, %v1168_v31 }
 0x2a1   : > { %v1319_v33 = vpop.f32.mrf.mxu0 }
 0x2a2   : > { %v1320_v34 = vadd.f32 %v1319_v33, %v1243_v15 }
 0x2a3   : > { %v1644_v35 = vpop.f32.mrf.mxu0 }
 0x2a4   : > { %v1393_v36 = vadd.f32 %v1392_v25, %v1320_v34 }
 0x2a6   : > { %v1397_v37 = vsel %vm1396_vm11, %v1393_v36, -inf }
 0x2a7   : > { %1398 = vmax.xlane.f32.xlu0 %v1397_v37 }
 0x330   : > { %v1399_v38 = vpop.xlane.xlu0 %1398 }
 0x331   : > { %v1400_v39 = vsub.f32 %v1393_v36, %v1399_v38 }
 0x333   : > { %v1401_v40 = vmul.f32 1.442695, %v1400_v39 }
 0x335   : > { %1720 = vpow2.f32 %v1401_v40 }
 0x342   : > { %v1721_v41 = vpop.eup %1720 }
 0x343   : > { %v1403_v42 = vsel %vm1396_vm11, %v1721_v41, 0.0 }
 0x344   : > { %1404 = vadd.xlane.f32.xlu0 %v1403_v42 }
 0x3cd   : > { %v1405_v43 = vpop.xlane.xlu0 %1404 }
 0x3ce   : > { %1722 = vrcp.f32 %v1405_v43 }
 0x3db   : > { %v1723_v44 = vpop.eup %1722 }
 0x3dc   : > { %v1407_v45 = vmul.f32 %v1723_v44, %v1721_v41 }
 0x3de   : > { %1408 = vst.msk [vmem:[#allocation6] sm:$0xf] %vm1396_vm11, %v1407_v45 }
 0x3df PF: > { %p2099_p9 = scmp.eq.s32.totalorder %s1481_s24, 7  ;;  %s1839_s10 = smov [#allocation6]  }
 0x3e0   : > { %s1418_s29 = sshll.u32 %s1839_s10, 4  ;;  %s1419_s29 = int_to_ptr.vmem [resolvable:$true] %s1418_s29 }
 0x3e1   : > { %s1752_s11 = scalar_lea.vmem %s1419_s29, 64  ;;  %p1759_p13 = scmp.lt.s32.totalorder %s1419_s29, %s1419_s29 }
 0x3e2   : > { %p1753_p10 = scmp.ne.s32.totalorder %s1419_s29, %s1752_s11  ;;  %p1760_p0 = scmp.lt.s32.totalorder %s1752_s11, %s1752_s11 }
 0x3e4   : > { %p1754_p11 = pnand %p1753_p10, %p2099_p9  ;;  %p1761_p1 = por %p1760_p0, %p1759_p13 }
 0x3e6   : > { %p1755_p12 = pneg %p1754_p11 }
 0x3e8   : > { %p1762_p2 = pnand %p1761_p1, %p1755_p12 }
 0x3ea   : > { %1765 = shalt.err (!%p1762_p2)
}
 0x3eb   : > { %1655 = dma.vmem_to_hbm [thread:$0]  (%p2099_p9), %s1419_s29, 64, %s2137_s5, [#allocation5]  }
 0x3ec   : > { %1805 = dma.done.wait (%p2099_p9), [#allocation5], 64  }
 0x3ed   : > { %1807 = vsyncadd (%p2099_p9), [#allocation5], 4294967232 }
 0x3ee PF: > { %s19_s23 = sadd.s32 1, %s1830_s23   ;;  %s2142_s18 = smov %s1814_s19 }
 0x3ef   : > { %p16_p3 = scmp.ge.s32.totalorder %s19_s23, 10   ;;  %s2143_s19 = smov %s1818_s20 }
 0x3f0   : > { %s2144_s20 = smov %s1921_s30  ;;  %s2145_s21 = smov %s1826_s22 }
 0x3f1   : > { %s2146_s22 = smov %s2148_s25  ;;  %18 = sbr.rel (!%p16_p3) target bundleno = 5 (0x5), region = 86 }
 0x3f6   :  { %1431 = vsyncpa [#allocation4], 1 }
 0x3f7   :  { %1433 = vsyncpa [#allocation4 + $0x1], 1 }
 0x3f8   :  { %1434 = vsyncpa [#allocation5], 1 }
 0x3f9   :  { %1436 = vsyncpa [#allocation5 + $0x1], 1 }

// kernel: tpu_custom_call.1
= control target key start
LH: loop header
LB: loop body
LE: loop exit
PB: predicated region body
PF: predicated region fallthrough
CT: control target
= control target key end

     0   :  { %10 = vsyncpa [#allocation4], 0  ;;  %s2132_s0 = inlined_call_operand.hbm [shape: f32[4,32,1024], index: 0, kind: input, shape index: {}]   ;;  %s2133_s1 = inlined_call_operand.vmem [shape: f32[32,16], index: 1, kind: input, shape index: {}]   ;;  %s2134_s2 = inlined_call_operand.vmem [shape: f32[1,16], index: 2, kind: input, shape index: {}]   ;;  %s2135_s3 = inlined_call_operand.vmem [shape: f32[16,3], index: 3, kind: input, shape index: {}]   ;;  %s2136_s4 = inlined_call_operand.vmem [shape: f32[1,3], index: 4, kind: input, shape index: {}]   ;;  %s2137_s5 = inlined_call_operand.hbm [shape: f32[4,3], index: 5, kind: output, shape index: {}]  }
   0x1   :  { %12 = vsyncpa [#allocation4 + $0x1], 0 }
   0x2   :  { %13 = vsyncpa [#allocation5], 0  ;;  %s1870_s18 = smov 0   ;;  %s1872_s19 = smov 0  }
   0x3   :  { %s1874_s20 = smov 0   ;;  %s1876_s21 = smov 0  }
   0x4   :  { %s1878_s22 = smov 0   ;;  %s1880_s23 = smov 0  }
   0x5 LB: > { %s1481_s24 = sadd.s32 4294967295, %s1830_s23   ;;  %s28_s25 = sadd.s32 1, %s1826_s22  ;;  %s1830_s23 = sphi %s1880_s23, %s19_s23   ;;  %s1826_s22 = sphi %s1878_s22, %s2146_s22   ;;  %s1822_s21 = sphi %s1876_s21, %s2145_s21   ;;  %s1818_s20 = sphi %s1874_s20, %s2144_s20   ;;  %s1814_s19 = sphi %s1872_s19, %s2143_s19   ;;  %s1810_s18 = sphi %s1870_s18, %s2142_s18  }
   0x6   : > { %p29_p0 = scmp.ge.s32.totalorder %s28_s25, 8  ;;  %s40_s26 = sadd.s32 1, %s1818_s20 }
   0x7   : > { %p47_p1 = scmp.ne.s32.totalorder %s1818_s20, %s1814_s19  ;;  %p48_p2 = scmp.eq.s32.totalorder %s1830_s23, 0 }
   0x8   : > { %s2148_s25 = smov (%p29_p0, %s28_s25), 0  ;;  %p53_p4 = scmp.ne.s32.totalorder %s1814_s19, %s1810_s18 }
   0x9   : > { %p1906_p3 = por %p48_p2, %p47_p1  ;;  %s36_s28 = ssub.s32 %s1826_s22, %s2148_s25 }
   0xa   : > { %p54_p5 = scmp.eq.s32.totalorder %s1481_s24, 0  ;;  %p38_p6 = scmp.eq.s32.totalorder %s36_s28, 0 }
   0xb   : > { %p1662_p8 = scmp.lt.s32.totalorder %s1830_s23, 8  ;;  %s199_s6 = sand.u32 1, %s1818_s20  }
   0xc   : > { %p1915_p7 = por %p54_p5, %p53_p4  ;;  %s1485_s7 = sshll.u32 %s1826_s22, 7 }
   0xd   : > { %s1921_s30 = scalar_select %p38_p6, %s1818_s20, %s40_s26  }
   0xe   : > { %s1484_s8 = sshll.u32 %s199_s6, 7  ;;  %s211_s11 = scalar_lea.hbm %s2132_s0, %s1485_s7 }
   0xf   : > { %s203_s12 = scalar_lea.vmem [#allocation3], %s1484_s8  ;;  %p1930_p9 = pnand %p1662_p8, %p1906_p3 }
  0x10   : > { %s212_s13 = sshll.u32 %s203_s12, 4  ;;  %p1486_p10 = scmp.ge.s32.totalorder %s1830_s23, 1  ;;  %s213_s13 = int_to_ptr.vmem [resolvable:$true] %s212_s13 }
  0x11   : > { %s200_s15 = scalar_lea.sflag [#allocation4], %s199_s6  ;;  %p1726_p11 = pneg %p1930_p9 }
  0x12   : > { %s1737_s16 = scalar_lea.vmem %s213_s13, 2048  ;;  %s1832_s17 = smov [#allocation3]  }
  0x13   : > { %p1738_p12 = scmp.ne.s32.totalorder %s213_s13, %s1737_s16  ;;  %s1742_s18 = sshll.u32 %s1832_s17, 4  ;;  %s1743_s18 = int_to_ptr.vmem [resolvable:$false] %s1742_s18 }
  0x14   : > { %s1744_s26 = scalar_lea.vmem %s1743_s18, 4096  ;;  %p1745_p1 = scmp.lt.s32.totalorder %s213_s13, %s1743_s18 }
  0x15   : > { %p1740_p13 = pnand %p1738_p12, %p1726_p11  ;;  %p1746_p2 = scmp.lt.s32.totalorder %s1744_s26, %s1737_s16 }
  0x17   : > { %p1741_p0 = pneg %p1740_p13  ;;  %p1747_p3 = por %p1746_p2, %p1745_p1 }
  0x19   : > { %p1748_p4 = pnand %p1747_p3, %p1741_p0 }
  0x1b   : > { %1751 = shalt.err (!%p1748_p4)
}
  0x1c   : > { %s1833_s27 = smov 1024   ;;  %s1834_s28 = smov 128  }
  0x1d   : > { %s1835_s6 = smov 8   ;;  %p220_p5 = scmp.lt.s32.totalorder %s1830_s23, 9 }
  0x1e   : > { %1661 = dma.hbm_to_vmem [thread:$0]  (!%p1930_p9), %s211_s11, 2048, %s213_s13, %s200_s15, %s1833_s27, %s1834_s28, %s1835_s6  }
  0x1f   : > { %p221_p6 = pnand %p1486_p10, %p220_p5 }
  0x20   : > { %s226_s7 = sand.u32 (!%p221_p6), 1, %s1814_s19  }
  0x21   : > { %224 = sbr.rel (%p221_p6) target bundleno = 1006 (0x3ee), region = 40  ;;  %s1487_s8 = sshll.u32 (!%p221_p6), %s226_s7, 7 }
  0x22   : > { %s227_s9 = scalar_lea.sflag (!%p221_p6), [#allocation4], %s226_s7  ;;  %s1943_s10 = scalar_lea.vmem (!%p221_p6), [#allocation3], %s1487_s8 }
  0x26   : > { %1801 = dma.done.wait (%p1915_p7), %s227_s9, 2048  }
  0x27   : > { %1803 = vsyncadd (%p1915_p7), %s227_s9, 4294965248  ;;  %v255_v0 = vld [vmem:[%s1943_s10 + $0x10] sm:$0xff]  ;;  %v253_v1 = vld [vmem:[%s1943_s10] sm:$0xff]  ;;  %p1488_p7 = scmp.ne.s32.totalorder %s1822_s21, 0 }
  0x28   : > { %273 = vadd.xlane.f32.xlu1 %v255_v0  ;;  %269 = vadd.xlane.f32.xlu0 %v253_v1  ;;  %v256_v2 = vld [vmem:[%s1943_s10 + $0x18] sm:$0xff]  ;;  %v254_v3 = vld [vmem:[%s1943_s10 + $0x8] sm:$0xff]  ;;  %v257_v5 = vld [vmem:[%s1943_s10 + $0x20] sm:$0xff] }
  0x29   : > { %v258_v4 = vld [vmem:[%s1943_s10 + $0x28] sm:$0xff]  ;;  %v260_v6 = vld [vmem:[%s1943_s10 + $0x38] sm:$0xff]  ;;  %v259_v7 = vld [vmem:[%s1943_s10 + $0x30] sm:$0xff] }
  0x2a   : > { %v262_v8 = vld [vmem:[%s1943_s10 + $0x48] sm:$0xff]  ;;  %v261_v9 = vld [vmem:[%s1943_s10 + $0x40] sm:$0xff]  ;;  %v264_v10 = vld [vmem:[%s1943_s10 + $0x58] sm:$0xff] }
  0x2b   : > { %v263_v11 = vld [vmem:[%s1943_s10 + $0x50] sm:$0xff]  ;;  %v266_v12 = vld [vmem:[%s1943_s10 + $0x68] sm:$0xff]  ;;  %v265_v13 = vld [vmem:[%s1943_s10 + $0x60] sm:$0xff] }
  0x2c   : > { %275 = vadd.xlane.f32.xlu1 %v256_v2  ;;  %271 = vadd.xlane.f32.xlu0 %v254_v3  ;;  %v268_v14 = vld [vmem:[%s1943_s10 + $0x78] sm:$0xff]  ;;  %v267_v15 = vld [vmem:[%s1943_s10 + $0x70] sm:$0xff] }
  0x30   : > { %279 = vadd.xlane.f32.xlu1 %v258_v4  ;;  %277 = vadd.xlane.f32.xlu0 %v257_v5 }
  0x34   : > { %283 = vadd.xlane.f32.xlu1 %v260_v6  ;;  %281 = vadd.xlane.f32.xlu0 %v259_v7 }
  0x38   : > { %287 = vadd.xlane.f32.xlu1 %v262_v8  ;;  %285 = vadd.xlane.f32.xlu0 %v261_v9 }
  0x3c   : > { %291 = vadd.xlane.f32.xlu1 %v264_v10  ;;  %289 = vadd.xlane.f32.xlu0 %v263_v11 }
  0x40   : > { %295 = vadd.xlane.f32.xlu1 %v266_v12  ;;  %293 = vadd.xlane.f32.xlu0 %v265_v13 }
  0x44   : > { %299 = vadd.xlane.f32.xlu1 %v268_v14  ;;  %297 = vadd.xlane.f32.xlu0 %v267_v15 }
  0xb1   : > { %v274_v16 = vpop.xlane.xlu1 %273  ;;  %v270_v17 = vpop.xlane.xlu0 %269 }
  0xb5   : > { %v276_v18 = vpop.xlane.xlu1 %275  ;;  %v272_v19 = vpop.xlane.xlu0 %271 }
  0xb9   : > { %v280_v20 = vpop.xlane.xlu1 %279  ;;  %v278_v21 = vpop.xlane.xlu0 %277 }
  0xbd   : > { %v284_v22 = vpop.xlane.xlu1 %283  ;;  %v282_v23 = vpop.xlane.xlu0 %281 }
  0xc1   : > { %v288_v24 = vpop.xlane.xlu1 %287  ;;  %v286_v25 = vpop.xlane.xlu0 %285 }
  0xc5   : > { %v292_v26 = vpop.xlane.xlu1 %291  ;;  %v290_v27 = vpop.xlane.xlu0 %289 }
  0xc9   : > { %v296_v28 = vpop.xlane.xlu1 %295  ;;  %v294_v29 = vpop.xlane.xlu0 %293  ;;  %304 = sbr.rel (%p1488_p7) target bundleno = 208 (0xd0), region = 48 }
  0xcd   : > { %v300_v30 = vpop.xlane.xlu1 %299  ;;  %v298_v31 = vpop.xlane.xlu0 %297 }
  0xce   : > { %vm305_vm0 = vcmask 257024   ;;  %v1836_v32 = vmov 0.0  }
  0xcf   : > { %306 = vst.msk [vmem:[#allocation2] sm:$0xf] %vm305_vm0, %v1836_v32 }
  0xd0 PF: > { %v324_v33 = vlaneseq  ;;  %vm335_vm1 = vcmask 130112   ;;  %vm342_vm2 = vcmask 195712   ;;  %vm349_vm3 = vcmask 261312   ;;  %p1489_p8 = scmp.ne.s32.totalorder %s1822_s21, 7 }
  0xd1   : > { %vm408_vm4 = vcmask 1041409   ;;  %vm410_vm5 = vcmask 1042434   ;;  %vm412_vm6 = vcmask 1043459   ;;  %vm416_vm7 = vcmask 257024  }
  0xd2   : > { %v325_v34 = vand.u32 127, %v324_v33  ;;  %v327_v35 = vshrl.u32 %v324_v33, 7 }
  0xd4   : > { %v328_v36 = vsub.s32 %v325_v34, %v327_v35  ;;  %v330_v37 = vadd.s32 4294967288, %v325_v34  ;;  %v337_v38 = vadd.s32 4294967280, %v325_v34  ;;  %v344_v39 = vadd.s32 4294967272, %v325_v34 }
  0xd6   : > { %v329_v40 = vrot.slane %v270_v17, %v328_v36  ;;  %v333_v41 = vsub.s32 %v330_v37, %v327_v35  ;;  %v340_v42 = vsub.s32 %v337_v38, %v327_v35  ;;  %v347_v43 = vsub.s32 %v344_v39, %v327_v35  ;;  %v307_v7 = vld [vmem:[#allocation2] sm:$0xf] }
  0xd7   : > { %v354_v44 = vrot.slane %v278_v21, %v328_v36  ;;  %v373_v45 = vrot.slane %v286_v25, %v328_v36  ;;  %v392_v46 = vrot.slane %v294_v29, %v328_v36 }
  0xd8   : > { %v334_v47 = vrot.slane %v272_v19, %v333_v41  ;;  %v341_v48 = vrot.slane %v274_v16, %v340_v42  ;;  %v348_v49 = vrot.slane %v276_v18, %v347_v43  ;;  %v358_v50 = vrot.slane %v280_v20, %v333_v41 }
  0xd9   : > { %v363_v51 = vrot.slane %v282_v23, %v340_v42  ;;  %v368_v52 = vrot.slane %v284_v22, %v347_v43  ;;  %v377_v53 = vrot.slane %v288_v24, %v333_v41  ;;  %v382_v54 = vrot.slane %v290_v27, %v340_v42 }
  0xda   : > { %v336_v55 = vsel %vm335_vm1, %v334_v47, %v329_v40  ;;  %v359_v56 = vsel %vm335_vm1, %v358_v50, %v354_v44  ;;  %v387_v57 = vrot.slane %v292_v26, %v347_v43  ;;  %v396_v58 = vrot.slane %v296_v28, %v333_v41 }
  0xdb   : > { %v343_v59 = vsel %vm342_vm2, %v341_v48, %v336_v55  ;;  %v364_v60 = vsel %vm342_vm2, %v363_v51, %v359_v56  ;;  %v378_v61 = vsel %vm335_vm1, %v377_v53, %v373_v45  ;;  %v401_v62 = vrot.slane %v298_v31, %v340_v42 }
  0xdc   : > { %v350_v63 = vsel %vm349_vm3, %v348_v49, %v343_v59  ;;  %v369_v0 = vsel %vm349_vm3, %v368_v52, %v364_v60  ;;  %v383_v1 = vsel %vm342_vm2, %v382_v54, %v378_v61  ;;  %v397_v2 = vsel %vm335_vm1, %v396_v58, %v392_v46 }
  0xdd   : > { %v388_v3 = vsel %vm349_vm3, %v387_v57, %v383_v1  ;;  %v402_v4 = vsel %vm342_vm2, %v401_v62, %v397_v2  ;;  %v406_v5 = vrot.slane %v300_v30, %v347_v43  ;;  %v409_v6 = vsel %vm408_vm4, %v369_v0, %v350_v63 }
  0xde   : > { %v411_v8 = vsel %vm410_vm5, %v388_v3, %v409_v6 }
  0xdf   : > { %v407_v9 = vsel %vm349_vm3, %v406_v5, %v402_v4  ;;  %421 = sbr.rel (%p1489_p8) target bundleno = 991 (0x3df), region = 52 }
  0xe0   : > { %v413_v10 = vsel %vm412_vm6, %v407_v9, %v411_v8 }
  0xe1   : > { %v415_v11 = vadd.f32 %v413_v10, %v307_v7 }
  0xe3   : > { %417 = vst.msk [vmem:[#allocation2] sm:$0xf] %vm416_vm7, %v415_v11 }
  0xe4   : > { %v427_v12 = vld [vmem:[%s2133_s1 + $0x18] sm:$0xff]  ;;  %v426_v13 = vld [vmem:[%s2133_s1 + $0x10] sm:$0xff]  ;;  %v425_v14 = vld [vmem:[%s2133_s1 + $0x8] sm:$0xff]  ;;  %vm435_vm8 = vcmask 261120   ;;  %v1837_v15 = vmov 0.0   ;;  %vm1838_vm9 = vmmov 0  }
  0xe5   : > { %1544 = vmatprep.subr.mxu0 %v1837_v15  ;;  %v1992_v16 = vand.u32 4294901760, %v427_v12  ;;  %v1994_v17 = vand.u32 4294901760, %v426_v13  ;;  %v1996_v18 = vand.u32 4294901760, %v425_v14  ;;  %1555 = vmatprep.subr.mxu1 %v1837_v15  ;;  %v424_v19 = vld [vmem:[%s2133_s1] sm:$0xff]  ;;  %v925_v45 = vld [vmem:[%s2135_s3 + $0x8] sm:$0xff]  ;;  %vm933_vm10 = vcmask 130048  }
  0xe6   : > { %v2002_v21 = vand.u32 4294901760, %v424_v19  ;;  %1552 = vmatprep.mubr.msk.f32.mxu0 %vm1838_vm9, %v1837_v15  ;;  %1563 = vmatprep.mubr.msk.f32.mxu1 %vm1838_vm9, %v1837_v15  ;;  %v966_v46 = vand.u32 4294901760, %v925_v45  ;;  %v924_v47 = vld [vmem:[%s2135_s3] sm:$0xff]  ;;  %vm1396_vm11 = vcmask 19456  }
  0xe7   : > { %1545 = vmatpush3.msra.mxu0 %v1992_v16  ;;  %v544_v23 = vsub.f32 %v427_v12, %v1992_v16  ;;  %v551_v24 = vsub.f32 %v426_v13, %v1994_v17  ;;  %v558_v25 = vsub.f32 %v425_v14, %v1996_v18  ;;  %v969_v49 = vand.u32 4294901760, %v924_v47  ;;  %v1490_v60 = vld [vmem:[%s2134_s2] ss:$0 sm:$0xff] }
  0xe8   : > { %1546 = vmatprep.subr.mxu0 %v1837_v15  ;;  %v565_v27 = vsub.f32 %v424_v19, %v2002_v21  ;;  %v1044_v48 = vsub.f32 %v925_v45, %v966_v46 }
  0xe9   : > { %1547 = vmatpush3.msra.mxu0 %v1994_v17  ;;  %v545_v28 = vand.u32 4294901760, %v544_v23  ;;  %v552_v29 = vand.u32 4294901760, %v551_v24  ;;  %v559_v31 = vand.u32 4294901760, %v558_v25  ;;  %v1051_v51 = vsub.f32 %v924_v47, %v969_v49 }
  0xea   : > { %v422_v20 = vld [vmem:[#allocation2] sm:$0xf]  ;;  %1548 = vmatprep.subr.mxu0 %v1837_v15  ;;  %v566_v32 = vand.u32 4294901760, %v565_v27  ;;  %v1045_v50 = vand.u32 4294901760, %v1044_v48 }
  0xeb   : > { %v423_v22 = vmul.f32 0.0009765625, %v422_v20  ;;  %1549 = vmatpush3.msra.mxu0 %v1996_v18  ;;  %v546_v33 = vsub.f32 %v544_v23, %v545_v28  ;;  %v553_v34 = vsub.f32 %v551_v24, %v552_v29  ;;  %v560_v36 = vsub.f32 %v558_v25, %v559_v31 }
  0xec   : > { %1550 = vmatprep.subr.mxu0 %v1837_v15  ;;  %v567_v40 = vsub.f32 %v565_v27, %v566_v32  ;;  %v1046_v52 = vsub.f32 %v1044_v48, %v1045_v50  ;;  %v1052_v53 = vand.u32 4294901760, %v1051_v51 }
  0xed   : > { %v437_v26 = vsel %vm435_vm8, %v423_v22, 0  ;;  %v547_v37 = vand.u32 4294901760, %v546_v33  ;;  %1551 = vmatpush3.msra.mxu0 %v2002_v21  ;;  %v554_v38 = vand.u32 4294901760, %v553_v34  ;;  %v561_v42 = vand.u32 4294901760, %v560_v36 }
  0xee   : > { %v2016_v30 = vand.u32 4294901760, %v437_v26  ;;  %1566 = vmatprep.subr.mxu0 %v1837_v15  ;;  %v568_v44 = vand.u32 4294901760, %v567_v40  ;;  %v1047_v54 = vand.u32 4294901760, %v1046_v52  ;;  %v1053_v55 = vsub.f32 %v1051_v51, %v1052_v53 }
  0xef   : > { %1556 = vmatpush3.msra.mxu1 %v547_v37 }
  0xf0   : > { %v509_v35 = vsub.f32 %v437_v26, %v2016_v30  ;;  %1557 = vmatprep.subr.mxu1 %v1837_v15  ;;  %v1054_v56 = vand.u32 4294901760, %v1053_v55 }
  0xf1   : > { %1558 = vmatpush3.msra.mxu1 %v554_v38 }
  0xf2   : > { %v510_v39 = vand.u32 4294901760, %v509_v35  ;;  %1559 = vmatprep.subr.mxu1 %v1837_v15 }
  0xf3   : > { %1560 = vmatpush3.msra.mxu1 %v561_v42 }
  0xf4   : > { %v511_v41 = vsub.f32 %v509_v35, %v510_v39  ;;  %1561 = vmatprep.subr.mxu1 %v1837_v15 }
  0xf5   : > { %1562 = vmatpush3.msra.mxu1 %v568_v44 }
  0xf6   : > { %v512_v43 = vand.u32 4294901760, %v511_v41  ;;  %1564 = vmatmul.mubr.f32.vlgmr.msra.gmra.mxu1 %v2016_v30  ;;  %1577 = vmatprep.subr.mxu1 %v1837_v15 }
  0xf7   : > { %1578 = vmatpush3.msra.mxu1 %v1992_v16  ;;  %1585 = vmatprep.mubr.msk.f32.mxu1 %vm1838_vm9, %v1837_v15 }
  0xf8   : > { %1553 = vmatmul.mubr.f32.vlgmr.msra.gmra.mxu0 %v512_v43  ;;  %1579 = vmatprep.subr.mxu1 %v1837_v15 }
  0xf9   : > { %1567 = vmatpush3.msra.mxu0 %v544_v23  ;;  %1574 = vmatprep.mubr.msk.f32.mxu0 %vm1838_vm9, %v1837_v15  ;;  %v1491_v23 = vld [vmem:[%s2136_s4] ss:$0 sm:$0xff] }
  0xfa   : > { %1568 = vmatprep.subr.mxu0 %v1837_v15  ;;  %1580 = vmatpush3.msra.mxu1 %v1994_v17 }
  0xfb   : > { %1569 = vmatpush3.msra.mxu0 %v551_v24  ;;  %1581 = vmatprep.subr.mxu1 %v1837_v15 }
  0xfc   : > { %1570 = vmatprep.subr.mxu0 %v1837_v15  ;;  %1582 = vmatpush3.msra.mxu1 %v1996_v18 }
  0xfd   : > { %1571 = vmatpush3.msra.mxu0 %v558_v25  ;;  %1583 = vmatprep.subr.mxu1 %v1837_v15 }
  0xfe   : > { %1572 = vmatprep.subr.mxu0 %v1837_v15  ;;  %1584 = vmatpush3.msra.mxu1 %v2002_v21 }
  0xff   : > { %1573 = vmatpush3.msra.mxu0 %v565_v27  ;;  %1586 = vmatmul.mubr.f32.vlgmr.msra.gmra.mxu1 %v510_v39 }
 0x100   : > { %1575 = vmatmul.mubr.f32.vlgmr.msra.gmra.mxu0 %v509_v35  ;;  %1588 = vmatprep.subr.mxu0 %v1837_v15 }
 0x101   : > { %1589 = vmatpush3.msra.mxu0 %v545_v28  ;;  %1599 = vmatprep.subr.mxu1 %v1837_v15 }
 0x102   : > { %1590 = vmatprep.subr.mxu0 %v1837_v15  ;;  %1600 = vmatpush3.msra.mxu1 %v1992_v16 }
 0x103   : > { %1591 = vmatpush3.msra.mxu0 %v552_v29  ;;  %1596 = vmatprep.mubr.msk.f32.mxu0 %vm1838_vm9, %v1837_v15 }
 0x104   : > { %1592 = vmatprep.subr.mxu0 %v1837_v15  ;;  %1601 = vmatprep.subr.mxu1 %v1837_v15 }
 0x105   : > { %1593 = vmatpush3.msra.mxu0 %v559_v31  ;;  %1602 = vmatpush3.msra.mxu1 %v1994_v17 }
 0x106   : > { %1594 = vmatprep.subr.mxu0 %v1837_v15  ;;  %1603 = vmatprep.subr.mxu1 %v1837_v15 }
 0x107   : > { %1595 = vmatpush3.msra.mxu0 %v566_v32  ;;  %1607 = vmatprep.mubr.msk.f32.mxu1 %vm1838_vm9, %v1837_v15 }
 0x108   : > { %1597 = vmatmul.mubr.f32.vlgmr.msra.gmra.mxu0 %v2016_v30  ;;  %1604 = vmatpush3.msra.mxu1 %v1996_v18 }
 0x109   : > { %1610 = vmatprep.subr.mxu0 %v1837_v15  ;;  %1605 = vmatprep.subr.mxu1 %v1837_v15 }
 0x10a   : > { %1614 = vmatprep.mubr.msk.f32.mxu0 %vm1838_vm9, %v1837_v15  ;;  %1606 = vmatpush3.msra.mxu1 %v2002_v21 }
 0x10b   : > { %1608 = vmatmul.mubr.f32.vlgmr.msra.gmra.mxu1 %v2016_v30  ;;  %1617 = vmatprep.subr.mxu1 %v1837_v15 }
 0x10c   : > { %1621 = vmatprep.mubr.msk.f32.mxu1 %vm1838_vm9, %v1837_v15  ;;  %1611 = vmatpush3.msra.mxu0 %v966_v46 }
 0x10d   : > { %1612 = vmatprep.subr.mxu0 %v1837_v15  ;;  %1618 = vmatpush3.msra.mxu1 %v1047_v54 }
 0x10e   : > { %1613 = vmatpush3.msra.mxu0 %v969_v49  ;;  %1619 = vmatprep.subr.mxu1 %v1837_v15 }
 0x10f   : > { %1624 = vmatprep.subr.mxu0 %v1837_v15  ;;  %1620 = vmatpush3.msra.mxu1 %v1054_v56 }
 0x110   : > { %1631 = vmatprep.subr.mxu1 %v1837_v15 }
 0x1b6   : > { %v605_v59 = vpop.f32.mrf.mxu1 }
 0x1b8   : > { %v514_v57 = vpop.f32.mrf.mxu0  ;;  %v1565_v61 = vpop.f32.mrf.mxu1 }
 0x1b9   : > { %v515_v62 = vadd.f32 %v1490_v60, %v514_v57 }
 0x1ba   : > { %v1554_v58 = vpop.f32.mrf.mxu0 }
 0x1bb   : > { %v606_v1 = vadd.f32 %v605_v59, %v515_v62 }
 0x1bf   : > { %v762_v2 = vpop.f32.mrf.mxu1 }
 0x1c0   : > { %v685_v63 = vpop.f32.mrf.mxu0 }
 0x1c1   : > { %v686_v3 = vadd.f32 %v685_v63, %v606_v1  ;;  %v1587_v4 = vpop.f32.mrf.mxu1 }
 0x1c2   : > { %v1576_v0 = vpop.f32.mrf.mxu0 }
 0x1c3   : > { %v763_v5 = vadd.f32 %v762_v2, %v686_v3 }
 0x1c8   : > { %v845_v6 = vpop.f32.mrf.mxu0 }
 0x1c9   : > { %v846_v8 = vadd.f32 %v845_v6, %v763_v5 }
 0x1ca   : > { %v1598_v7 = vpop.f32.mrf.mxu0 }
 0x1cb   : > { %v920_v9 = vpop.f32.mrf.mxu1 }
 0x1cc   : > { %v921_v10 = vadd.f32 %v920_v9, %v846_v8 }
 0x1cd   : > { %v1609_v11 = vpop.f32.mrf.mxu1 }
 0x1ce   : > { %v935_v12 = vsel %vm933_vm10, %v921_v10, 0 }
 0x1cf   : > { %v1004_v13 = vand.u32 4294901760, %v935_v12 }
 0x1d1   : > { %v1005_v14 = vsub.f32 %v935_v12, %v1004_v13  ;;  %1622 = vmatmul.mubr.f32.vlgmr.msra.gmra.mxu1 %v1004_v13 }
 0x1d2   : > { %1632 = vmatpush3.msra.mxu1 %v966_v46  ;;  %1635 = vmatprep.mubr.msk.f32.mxu1 %vm1838_vm9, %v1837_v15 }
 0x1d3   : > { %1633 = vmatprep.subr.mxu1 %v1837_v15  ;;  %v1006_v16 = vand.u32 4294901760, %v1005_v14 }
 0x1d4   : > { %1634 = vmatpush3.msra.mxu1 %v969_v49 }
 0x1d5   : > { %1636 = vmatmul.mubr.f32.vlgmr.msra.gmra.mxu1 %v1006_v16  ;;  %1645 = vmatprep.subr.mxu1 %v1837_v15  ;;  %v1007_v17 = vsub.f32 %v1005_v14, %v1006_v16 }
 0x1d6   : > { %1646 = vmatpush3.msra.mxu1 %v966_v46  ;;  %1649 = vmatprep.mubr.msk.f32.mxu1 %vm1838_vm9, %v1837_v15 }
 0x1d7   : > { %1647 = vmatprep.subr.mxu1 %v1837_v15  ;;  %v1008_v18 = vand.u32 4294901760, %v1007_v17 }
 0x1d8   : > { %1648 = vmatpush3.msra.mxu1 %v969_v49 }
 0x1d9   : > { %1615 = vmatmul.mubr.f32.vlgmr.msra.gmra.mxu0 %v1008_v18  ;;  %1650 = vmatmul.mubr.f32.vlgmr.msra.gmra.mxu1 %v1004_v13 }
 0x1da   : > { %1625 = vmatpush3.msra.mxu0 %v1044_v48  ;;  %1628 = vmatprep.mubr.msk.f32.mxu0 %vm1838_vm9, %v1837_v15 }
 0x1db   : > { %1626 = vmatprep.subr.mxu0 %v1837_v15 }
 0x1dc   : > { %1627 = vmatpush3.msra.mxu0 %v1051_v51 }
 0x1dd   : > { %1638 = vmatprep.subr.mxu0 %v1837_v15  ;;  %1629 = vmatmul.mubr.f32.vlgmr.msra.gmra.mxu0 %v1005_v14 }
 0x1de   : > { %1639 = vmatpush3.msra.mxu0 %v1045_v50  ;;  %1642 = vmatprep.mubr.msk.f32.mxu0 %vm1838_vm9, %v1837_v15 }
 0x1df   : > { %1640 = vmatprep.subr.mxu0 %v1837_v15 }
 0x1e0   : > { %1641 = vmatpush3.msra.mxu0 %v1052_v53 }
 0x1e1   : > { %1643 = vmatmul.mubr.f32.vlgmr.msra.gmra.mxu0 %v1004_v13 }
 0x291   : > { %v1091_v19 = vpop.f32.mrf.mxu1 }
 0x293   : > { %v1623_v20 = vpop.f32.mrf.mxu1 }
 0x295   : > { %v1242_v21 = vpop.f32.mrf.mxu1 }
 0x297   : > { %v1637_v22 = vpop.f32.mrf.mxu1 }
 0x299   : > { %v1010_v24 = vpop.f32.mrf.mxu0  ;;  %v1392_v25 = vpop.f32.mrf.mxu1 }
 0x29a   : > { %v1011_v26 = vadd.f32 %v1491_v23, %v1010_v24 }
 0x29b   : > { %v1616_v27 = vpop.f32.mrf.mxu0  ;;  %v1651_v28 = vpop.f32.mrf.mxu1 }
 0x29c   : > { %v1092_v29 = vadd.f32 %v1091_v19, %v1011_v26 }
 0x29d   : > { %v1167_v30 = vpop.f32.mrf.mxu0 }
 0x29e   : > { %v1168_v31 = vadd.f32 %v1167_v30, %v1092_v29 }
 0x29f   : > { %v1630_v32 = vpop.f32.mrf.mxu0 }
 0x2a0   : > { %v1243_v15 = vadd.f32 %v1242_v21, %v1168_v31 }
 0x2a1   : > { %v1319_v33 = vpop.f32.mrf.mxu0 }
 0x2a2   : > { %v1320_v34 = vadd.f32 %v1319_v33, %v1243_v15 }
 0x2a3   : > { %v1644_v35 = vpop.f32.mrf.mxu0 }
 0x2a4   : > { %v1393_v36 = vadd.f32 %v1392_v25, %v1320_v34 }
 0x2a6   : > { %v1397_v37 = vsel %vm1396_vm11, %v1393_v36, -inf }
 0x2a7   : > { %1398 = vmax.xlane.f32.xlu0 %v1397_v37 }
 0x330   : > { %v1399_v38 = vpop.xlane.xlu0 %1398 }
 0x331   : > { %v1400_v39 = vsub.f32 %v1393_v36, %v1399_v38 }
 0x333   : > { %v1401_v40 = vmul.f32 1.442695, %v1400_v39 }
 0x335   : > { %1720 = vpow2.f32 %v1401_v40 }
 0x342   : > { %v1721_v41 = vpop.eup %1720 }
 0x343   : > { %v1403_v42 = vsel %vm1396_vm11, %v1721_v41, 0.0 }
 0x344   : > { %1404 = vadd.xlane.f32.xlu0 %v1403_v42 }
 0x3cd   : > { %v1405_v43 = vpop.xlane.xlu0 %1404 }
 0x3ce   : > { %1722 = vrcp.f32 %v1405_v43 }
 0x3db   : > { %v1723_v44 = vpop.eup %1722 }
 0x3dc   : > { %v1407_v45 = vmul.f32 %v1723_v44, %v1721_v41 }
 0x3de   : > { %1408 = vst.msk [vmem:[#allocation6] sm:$0xf] %vm1396_vm11, %v1407_v45 }
 0x3df PF: > { %p2099_p9 = scmp.eq.s32.totalorder %s1481_s24, 7  ;;  %s1839_s10 = smov [#allocation6]  }
 0x3e0   : > { %s1418_s29 = sshll.u32 %s1839_s10, 4  ;;  %s1419_s29 = int_to_ptr.vmem [resolvable:$true] %s1418_s29 }
 0x3e1   : > { %s1752_s11 = scalar_lea.vmem %s1419_s29, 64  ;;  %p1759_p13 = scmp.lt.s32.totalorder %s1419_s29, %s1419_s29 }
 0x3e2   : > { %p1753_p10 = scmp.ne.s32.totalorder %s1419_s29, %s1752_s11  ;;  %p1760_p0 = scmp.lt.s32.totalorder %s1752_s11, %s1752_s11 }
 0x3e4   : > { %p1754_p11 = pnand %p1753_p10, %p2099_p9  ;;  %p1761_p1 = por %p1760_p0, %p1759_p13 }
 0x3e6   : > { %p1755_p12 = pneg %p1754_p11 }
 0x3e8   : > { %p1762_p2 = pnand %p1761_p1, %p1755_p12 }
 0x3ea   : > { %1765 = shalt.err (!%p1762_p2)
}
 0x3eb   : > { %1655 = dma.vmem_to_hbm [thread:$0]  (%p2099_p9), %s1419_s29, 64, %s2137_s5, [#allocation5]  }
 0x3ec   : > { %1805 = dma.done.wait (%p2099_p9), [#allocation5], 64  }
 0x3ed   : > { %1807 = vsyncadd (%p2099_p9), [#allocation5], 4294967232 }
 0x3ee PF: > { %s19_s23 = sadd.s32 1, %s1830_s23   ;;  %s2142_s18 = smov %s1814_s19 }
 0x3ef   : > { %p16_p3 = scmp.ge.s32.totalorder %s19_s23, 10   ;;  %s2143_s19 = smov %s1818_s20 }
 0x3f0   : > { %s2144_s20 = smov %s1921_s30  ;;  %s2145_s21 = smov %s1826_s22 }
 0x3f1   : > { %s2146_s22 = smov %s2148_s25  ;;  %18 = sbr.rel (!%p16_p3) target bundleno = 5 (0x5), region = 86 }
 0x3f6   :  { %1431 = vsyncpa [#allocation4], 1 }
 0x3f7   :  { %1433 = vsyncpa [#allocation4 + $0x1], 1 }
 0x3f8   :  { %1434 = vsyncpa [#allocation5], 1 }
 0x3f9   :  { %1436 = vsyncpa [#allocation5 + $0x1], 1 }

</bundles_post_ra>
